<compile_context>
chip_gen: v6e
topology: v6e:2x2x1
jax: 0.10.0
libtpu: 0.0.40
codegen_flags: <defaults>
</compile_context>

<pallas_src>
import math

import jax
import jax.numpy as jnp
from jax.experimental import pallas as pl
from jax.experimental.pallas import tpu as pltpu

_NEG_INF = -1e30   # bias for padded vocab columns (finite -> no inf-inf NaNs)


def _round_up(x, m):
    return ((x + m - 1) // m) * m


def _pad_to(x, shape):
    return jnp.pad(x, [(0, s - d) for d, s in zip(x.shape, shape)])


def _whole_spec(shape):
    nd = len(shape)
    return pl.BlockSpec(tuple(shape), lambda i: (0,) * nd)


# ---------------------------------------------------------------------------
# Kernel bodies.
# ---------------------------------------------------------------------------
def _decode_steps(T, Hp, x_ref, h0,
                  w_gi_ref, w_gh_ref, b_gi_ref, b_gh_ref,
                  w_out_ref, b_out_ref, logp_ref, hid_ref):
    """T statically-unrolled GRU steps + output projection + log-softmax."""
    # Small bias rows are loaded once; the big weight matrices are read from
    # their VMEM refs inside each step so no huge value stays live across the
    # unrolled loop (avoids vreg spills).
    b_gi = b_gi_ref[...]
    b_gh = b_gh_ref[...]
    b_out = b_out_ref[...]

    h = h0                                            # (Bp, Hp) f32, padded lanes == 0
    for t in range(T):                                # static unroll (T is small)
        x_t = x_ref[t]                                # (Bp, Hp) bf16, already relu'd
        gi = jnp.dot(x_t, w_gi_ref[...],
                     preferred_element_type=jnp.float32) + b_gi          # (Bp, 3Hp)
        gh = jnp.dot(h.astype(jnp.bfloat16), w_gh_ref[...],
                     preferred_element_type=jnp.float32) + b_gh          # (Bp, 3Hp)
        # Gate segments sit at 128-lane-aligned offsets -> vreg-aligned slices.
        r = jax.nn.sigmoid(gi[:, 0:Hp] + gh[:, 0:Hp])
        zg = jax.nn.sigmoid(gi[:, Hp:2 * Hp] + gh[:, Hp:2 * Hp])
        n = jnp.tanh(gi[:, 2 * Hp:3 * Hp] + r * gh[:, 2 * Hp:3 * Hp])
        h = (1.0 - zg) * n + zg * h                   # padded lanes stay exactly 0

        # Output projection + LogSoftmax(dim=1).  Padded vocab columns carry a
        # -1e30 bias so they vanish from the max / logsumexp automatically.
        logits = jnp.dot(h.astype(jnp.bfloat16), w_out_ref[...],
                         preferred_element_type=jnp.float32) + b_out      # (Bp, Vp)
        m = jnp.max(logits, axis=1, keepdims=True)
        lse = jnp.log(jnp.sum(jnp.exp(logits - m), axis=1, keepdims=True)) + m
        logp_ref[t] = logits - lse

    hid_ref[...] = h                                  # single final-hidden store


def _make_kernel(T, B, Bp, Hp, L, run_vae_head):
    if run_vae_head:
        def kernel(x_ref, enc_ref, noise_ref,
                   w_mv_ref, b_mv_ref, w_l2h_ref, b_l2h_ref,
                   w_gi_ref, w_gh_ref, b_gi_ref, b_gh_ref,
                   w_out_ref, b_out_ref,
                   logp_ref, hid_ref, kl_ref):
            # ---- VAE head (order == 0): fused mean/logv matmul --------------
            henc = enc_ref[...].astype(jnp.bfloat16)                     # (Bp, 2H)
            mv = jnp.dot(henc, w_mv_ref[...],
                         preferred_element_type=jnp.float32) + b_mv_ref[...]
            mean, logv = mv[:, 0:L], mv[:, L:2 * L]
            std = jnp.exp(0.5 * logv)
            z = noise_ref[...] * std + mean                              # reparameterize
            h0 = (jnp.dot(z.astype(jnp.bfloat16), w_l2h_ref[...],
                          preferred_element_type=jnp.float32) + b_l2h_ref[...])
            # KL over the *real* batch rows only (padded rows masked out).
            row_mask = (jax.lax.broadcasted_iota(jnp.int32, (Bp, L), 0)
                        < B).astype(jnp.float32)
            kl_ref[0, 0] = -0.5 * jnp.sum(
                row_mask * (1.0 + logv - mean * mean - jnp.exp(logv)))
            # ---- decode steps -----------------------------------------------
            _decode_steps(T, Hp, x_ref, h0, w_gi_ref, w_gh_ref, b_gi_ref,
                          b_gh_ref, w_out_ref, b_out_ref, logp_ref, hid_ref)
        return kernel

    def kernel(x_ref, h_init_ref,
               w_gi_ref, w_gh_ref, b_gi_ref, b_gh_ref,
               w_out_ref, b_out_ref,
               logp_ref, hid_ref):
        _decode_steps(T, Hp, x_ref, h_init_ref[...], w_gi_ref, w_gh_ref,
                      b_gi_ref, b_gh_ref, w_out_ref, b_out_ref,
                      logp_ref, hid_ref)
    return kernel


# ---------------------------------------------------------------------------
# Wrappers.
# ---------------------------------------------------------------------------
def auto_decoder_run(params, token_ids, hidden, noise, *, first_order, kl_prev=None):
    """Run the AutoDecoder for T consecutive steps (orders first_order..+T-1)
    in a single pallas_call.

    token_ids: (T, B) int32 tokens fed at each step.
    hidden   : (2, B, H) encoder hidden if first_order == 0, else (1, B, H)
               decoder hidden from the previous step.
    noise    : (B, latent_dim) standard-normal sample (torch.randn equivalent).
    Returns (log_probs (T, B, V), hidden (1, B, H), kl scalar).
    """
    H, Hp, L, V, Vp = params["H"], params["Hp"], params["L"], params["V"], params["Vp"]
    T, B = token_ids.shape
    Bp = _round_up(max(B, 1), 8)

    # Embedding lookup + ReLU hoisted out of the kernel (plain XLA gather);
    # ids are clamped so out-of-range tokens can never index OOB.
    ids = jnp.clip(token_ids.astype(jnp.int32), 0, V - 1)
    x = jnp.maximum(jnp.take(params["emb"], ids, axis=0), 0.0)      # (T, B, Hp) f32
    x = _pad_to(x, (T, Bp, Hp)).astype(jnp.bfloat16)

    run_vae_head = (first_order == 0)
    if run_vae_head:
        # Matches `hidden.view(batch_size, -1)` on the raw (2, B, H) tensor
        # (direction-major flatten), exactly as written in the reference code.
        enc_flat = _pad_to(hidden.reshape(B, 2 * H).astype(jnp.float32), (Bp, 2 * H))
        noise_p = _pad_to(noise.astype(jnp.float32), (Bp, L))
        operands = [x, enc_flat, noise_p,
                    params["w_h2mv"], params["b_h2mv"],
                    params["w_l2h"], params["b_l2h"],
                    params["w_gi"], params["w_gh"], params["b_gi"], params["b_gh"],
                    params["w_out"], params["b_out"]]
        out_shape = (jax.ShapeDtypeStruct((T, Bp, Vp), jnp.float32),
                     jax.ShapeDtypeStruct((Bp, Hp), jnp.float32),
                     jax.ShapeDtypeStruct((1, 1), jnp.float32))
        out_specs = (_whole_spec((T, Bp, Vp)), _whole_spec((Bp, Hp)),
                     pl.BlockSpec(memory_space=pltpu.MemorySpace.SMEM))
    else:
        h_init = _pad_to(hidden.reshape(B, H).astype(jnp.float32), (Bp, Hp))
        operands = [x, h_init,
                    params["w_gi"], params["w_gh"], params["b_gi"], params["b_gh"],
                    params["w_out"], params["b_out"]]
        out_shape = (jax.ShapeDtypeStruct((T, Bp, Vp), jnp.float32),
                     jax.ShapeDtypeStruct((Bp, Hp), jnp.float32))
        out_specs = (_whole_spec((T, Bp, Vp)), _whole_spec((Bp, Hp)))

    in_specs = [_whole_spec(op.shape) for op in operands]

    # Explicit VMEM budget: everything is a whole-array block; allow for
    # possible double-buffering plus headroom, floor at 16 MiB (v5e default),
    # cap at 64 MiB (v7x physical).
    op_bytes = sum(int(op.size) * op.dtype.itemsize for op in operands)
    out_bytes = sum(math.prod(s.shape) * jnp.dtype(s.dtype).itemsize
                    for s in out_shape)
    vmem_limit = int(min(64 << 20,
                         max(16 << 20, 2 * (op_bytes + out_bytes) + (4 << 20))))

    kernel = _make_kernel(T, B, Bp, Hp, L, run_vae_head)

    outs = pl.pallas_call(
        kernel,
        out_shape=out_shape,
        grid=(1,),
        in_specs=in_specs,
        out_specs=out_specs,
        compiler_params=pltpu.CompilerParams(
            dimension_semantics=("arbitrary",),
            vmem_limit_bytes=vmem_limit,
        ),
    )(*operands)

    if run_vae_head:
        logp_p, hid_p, kl_out = outs
        kl = kl_out[0, 0]
    else:
        logp_p, hid_p = outs
        kl = kl_prev

    logp = logp_p[:, :B, :V]
    hidden_out = hid_p[:B, :H].reshape(1, B, H)
    return logp, hidden_out, kl


def auto_decoder_forward(params, input_ids, hidden, order, noise, kl_prev=None):
    """Single-step forward matching AutoDecoder.forward(input, hidden, order)."""
    logp, hidden_out, kl = auto_decoder_run(
        params, input_ids.reshape(1, -1), hidden, noise,
        first_order=order, kl_prev=kl_prev)
    return logp[0], hidden_out, kl


# ---------------------------------------------------------------------------
# Deterministic synthetic parameters (PyTorch-like uniform init), stored in
# the kernel's layout: linear weights transposed (fan_in, fan_out) and bf16,
# biases f32, hidden axis padded to Hp = round_up(H, 128), GRU gates [r|z|n]
# each placed at a 128-lane-aligned offset, vocab axis padded to 128 lanes.
# ---------------------------------------------------------------------------
def init_params(key, hidden_dim, output_dim, latent_dim):
    H, V, L = hidden_dim, output_dim, latent_dim
    Hp = _round_up(H, 128)
    Vp = _round_up(V, 128)
    ks = jax.random.split(key, 7)

    def lin(k, fan_in, fan_out):
        bound = 1.0 / float(fan_in) ** 0.5
        kw, kb = jax.random.split(k)
        w = jax.random.uniform(kw, (fan_in, fan_out), jnp.float32, -bound, bound)
        b = jax.random.uniform(kb, (1, fan_out), jnp.float32, -bound, bound)
        return w, b

    p = {"H": H, "Hp": Hp, "L": L, "V": V, "Vp": Vp}

    # hidden2mean / hidden2logv fused into one (2H, 2L) matmul: cols [mean|logv].
    w_m, b_m = lin(ks[0], 2 * H, L)
    w_lv, b_lv = lin(ks[1], 2 * H, L)
    p["w_h2mv"] = jnp.concatenate([w_m, w_lv], axis=1).astype(jnp.bfloat16)
    p["b_h2mv"] = jnp.concatenate([b_m, b_lv], axis=1)

    # latent2hidden, hidden axis zero-padded to Hp.
    w, b = lin(ks[2], L, H)
    p["w_l2h"] = _pad_to(w, (L, Hp)).astype(jnp.bfloat16)
    p["b_l2h"] = _pad_to(b, (1, Hp))

    # nn.Embedding(V, H, padding_idx=0): row 0 zero; hidden cols zero-padded.
    # Stays in HBM (gather is done by XLA in the wrapper), so kept f32.
    emb = jax.random.normal(ks[3], (V, H), jnp.float32).at[0].set(0.0)
    p["emb"] = _pad_to(emb, (V, Hp))

    # GRU weights in PyTorch gate order [r|z|n], stored transposed; each gate
    # block occupies cols [g*Hp : g*Hp+H] of a (Hp, 3*Hp) matrix so the
    # in-kernel gate slices are 128-lane aligned.  Padded rows/cols are zero.
    def gru_block(k):
        w, b = lin(k, H, 3 * H)                         # bound = 1/sqrt(H)
        wp = jnp.zeros((Hp, 3 * Hp), jnp.float32)
        bp = jnp.zeros((1, 3 * Hp), jnp.float32)
        for g in range(3):
            wp = wp.at[:H, g * Hp:g * Hp + H].set(w[:, g * H:(g + 1) * H])
            bp = bp.at[:, g * Hp:g * Hp + H].set(b[:, g * H:(g + 1) * H])
        return wp.astype(jnp.bfloat16), bp

    p["w_gi"], p["b_gi"] = gru_block(ks[4])
    p["w_gh"], p["b_gh"] = gru_block(ks[5])

    # Output linear: hidden rows zero-padded; padded vocab columns get zero
    # weights and a -1e30 bias so they drop out of the log-softmax.
    w, b = lin(ks[6], H, V)
    p["w_out"] = _pad_to(w, (Hp, Vp)).astype(jnp.bfloat16)
    p["b_out"] = jnp.concatenate(
        [b, jnp.full((1, Vp - V), _NEG_INF, jnp.float32)], axis=1)
    return p


if __name__ == "__main__":
    B, H, L, V = 2, 32, 16, 64     # batch, AUTOhidden_dim, latent_dim, AUTOoutput_dim
    T = 5                          # fused decode steps (orders 0..T-1)

    key = jax.random.PRNGKey(0)
    pkey, hkey, ikey, nkey = jax.random.split(key, 4)

    params = init_params(pkey, H, V, L)
    enc_hidden = jax.random.normal(hkey, (2, B, H), jnp.float32)   # bidirectional encoder hidden
    tokens = jax.random.randint(ikey, (T, B), 0, V, dtype=jnp.int32)
    noise = jax.random.normal(nkey, (B, L), jnp.float32)           # torch.randn([B, latent_dim])

    # Fused multi-step decode (one pallas_call): equivalent to calling
    # AutoDecoder.forward with order = 0, 1, ..., T-1.
    logp_seq, hidden_T, kl = auto_decoder_run(params, tokens, enc_hidden, noise,
                                              first_order=0)

    # Single-step API matching the PyTorch forward signature (order==0, then 1).
    logp0, hidden1, kl0 = auto_decoder_forward(params, tokens[0], enc_hidden, 0, noise)
    logp1, hidden2, kl1 = auto_decoder_forward(params, tokens[1], hidden1, 1, noise,
                                               kl_prev=kl0)

    jax.block_until_ready((logp_seq, hidden_T, kl, logp0, hidden1, kl0,
                           logp1, hidden2, kl1))

    assert logp_seq.shape == (T, B, V) and hidden_T.shape == (1, B, H)
    assert logp0.shape == (B, V) and hidden1.shape == (1, B, H)
    assert bool(jnp.all(jnp.isfinite(logp_seq)))
    # The fused-loop path and the step-by-step path must agree.
    assert bool(jnp.allclose(logp_seq[0], logp0, atol=1e-5))
    assert bool(jnp.allclose(logp_seq[1], logp1, atol=1e-5))
    assert bool(jnp.allclose(kl, kl0, atol=1e-5))
    print("KERNEL_OK")
</pallas_src>

<mosaic_0001>
module attributes {stable_mosaic.version = 11 : i64} {
  func.func @kernel(%arg0: i32, %arg1: memref<5x8x128xbf16, #tpu.memory_space<vmem>>, %arg2: memref<8x64xf32, #tpu.memory_space<vmem>>, %arg3: memref<8x16xf32, #tpu.memory_space<vmem>>, %arg4: memref<64x32xbf16, #tpu.memory_space<vmem>>, %arg5: memref<1x32xf32, #tpu.memory_space<vmem>>, %arg6: memref<16x128xbf16, #tpu.memory_space<vmem>>, %arg7: memref<1x128xf32, #tpu.memory_space<vmem>>, %arg8: memref<128x384xbf16, #tpu.memory_space<vmem>>, %arg9: memref<128x384xbf16, #tpu.memory_space<vmem>>, %arg10: memref<1x384xf32, #tpu.memory_space<vmem>>, %arg11: memref<1x384xf32, #tpu.memory_space<vmem>>, %arg12: memref<128x128xbf16, #tpu.memory_space<vmem>>, %arg13: memref<1x128xf32, #tpu.memory_space<vmem>>, %arg14: memref<5x8x128xf32, #tpu.memory_space<vmem>>, %arg15: memref<8x128xf32, #tpu.memory_space<vmem>>, %arg16: memref<1x1xf32, #tpu.memory_space<smem>>) attributes {dimension_semantics = [#tpu.dimension_semantics<arbitrary>], iteration_bounds = array<i64: 1>, scalar_prefetch = 0 : i64, scratch_operands = 0 : i64, tpu.core_type = #tpu.core_type<tc>, window_params = [{pipeline_mode = #tpu.pipeline_mode<synchronous>, transform_indices = @transform_0, window_bounds = array<i64: 5, 8, 128>}, {pipeline_mode = #tpu.pipeline_mode<synchronous>, transform_indices = @transform_1, window_bounds = array<i64: 8, 64>}, {pipeline_mode = #tpu.pipeline_mode<synchronous>, transform_indices = @transform_2, window_bounds = array<i64: 8, 16>}, {pipeline_mode = #tpu.pipeline_mode<synchronous>, transform_indices = @transform_3, window_bounds = array<i64: 64, 32>}, {pipeline_mode = #tpu.pipeline_mode<synchronous>, transform_indices = @transform_4, window_bounds = array<i64: 1, 32>}, {pipeline_mode = #tpu.pipeline_mode<synchronous>, transform_indices = @transform_5, window_bounds = array<i64: 16, 128>}, {pipeline_mode = #tpu.pipeline_mode<synchronous>, transform_indices = @transform_6, window_bounds = array<i64: 1, 128>}, {pipeline_mode = #tpu.pipeline_mode<synchronous>, transform_indices = @transform_7, window_bounds = array<i64: 128, 384>}, {pipeline_mode = #tpu.pipeline_mode<synchronous>, transform_indices = @transform_8, window_bounds = array<i64: 128, 384>}, {pipeline_mode = #tpu.pipeline_mode<synchronous>, transform_indices = @transform_9, window_bounds = array<i64: 1, 384>}, {pipeline_mode = #tpu.pipeline_mode<synchronous>, transform_indices = @transform_10, window_bounds = array<i64: 1, 384>}, {pipeline_mode = #tpu.pipeline_mode<synchronous>, transform_indices = @transform_11, window_bounds = array<i64: 128, 128>}, {pipeline_mode = #tpu.pipeline_mode<synchronous>, transform_indices = @transform_12, window_bounds = array<i64: 1, 128>}, {pipeline_mode = #tpu.pipeline_mode<synchronous>, transform_indices = @transform_13, window_bounds = array<i64: 5, 8, 128>}, {pipeline_mode = #tpu.pipeline_mode<synchronous>, transform_indices = @transform_14, window_bounds = array<i64: 8, 128>}, {transform_indices = @transform_15, window_bounds = array<i64: 1, 1>}]} {
    %c0 = arith.constant 0 : index
    %c0_0 = arith.constant 0 : index
    %0 = vector.load %arg2[%c0, %c0_0] : memref<8x64xf32, #tpu.memory_space<vmem>>, vector<8x64xf32>
    %1 = arith.truncf %0 : vector<8x64xf32> to vector<8x64xbf16>
    %c0_1 = arith.constant 0 : index
    %c0_2 = arith.constant 0 : index
    %2 = vector.load %arg4[%c0_1, %c0_2] : memref<64x32xbf16, #tpu.memory_space<vmem>>, vector<64x32xbf16>
    %cst = arith.constant dense<0.000000e+00> : vector<8x32xf32>
    %3 = tpu.matmul %1, %2, %cst {dimension_numbers = #tpu.dot_dimension_numbers<[1], [0], [0], [1], [0, 0, 1, 1], [], []>} : vector<8x64xbf16>, vector<64x32xbf16>, vector<8x32xf32> -> vector<8x32xf32>
    %c0_3 = arith.constant 0 : index
    %c0_4 = arith.constant 0 : index
    %4 = vector.load %arg5[%c0_3, %c0_4] : memref<1x32xf32, #tpu.memory_space<vmem>>, vector<1x32xf32>
    %5 = vector.broadcast %4 : vector<1x32xf32> to vector<8x32xf32>
    %6 = arith.addf %3, %5 : vector<8x32xf32>
    %7 = vector.extract_strided_slice %6 {offsets = [0, 0], sizes = [8, 16], strides = [1, 1]} : vector<8x32xf32> to vector<8x16xf32>
    %8 = vector.extract_strided_slice %6 {offsets = [0, 16], sizes = [8, 16], strides = [1, 1]} : vector<8x32xf32> to vector<8x16xf32>
    %cst_5 = arith.constant 5.000000e-01 : f32
    %9 = vector.broadcast %cst_5 : f32 to vector<8x16xf32>
    %10 = arith.mulf %9, %8 : vector<8x16xf32>
    %11 = math.exp %10 : vector<8x16xf32>
    %c0_6 = arith.constant 0 : index
    %c0_7 = arith.constant 0 : index
    %12 = vector.load %arg3[%c0_6, %c0_7] : memref<8x16xf32, #tpu.memory_space<vmem>>, vector<8x16xf32>
    %13 = arith.mulf %12, %11 : vector<8x16xf32>
    %14 = arith.addf %13, %7 : vector<8x16xf32>
    %15 = arith.truncf %14 : vector<8x16xf32> to vector<8x16xbf16>
    %c0_8 = arith.constant 0 : index
    %c0_9 = arith.constant 0 : index
    %16 = vector.load %arg6[%c0_8, %c0_9] : memref<16x128xbf16, #tpu.memory_space<vmem>>, vector<16x128xbf16>
    %cst_10 = arith.constant dense<0.000000e+00> : vector<8x128xf32>
    %17 = tpu.matmul %15, %16, %cst_10 {dimension_numbers = #tpu.dot_dimension_numbers<[1], [0], [0], [1], [0, 0, 1, 1], [], []>} : vector<8x16xbf16>, vector<16x128xbf16>, vector<8x128xf32> -> vector<8x128xf32>
    %c0_11 = arith.constant 0 : index
    %c0_12 = arith.constant 0 : index
    %18 = vector.load %arg7[%c0_11, %c0_12] : memref<1x128xf32, #tpu.memory_space<vmem>>, vector<1x128xf32>
    %19 = vector.broadcast %18 : vector<1x128xf32> to vector<8x128xf32>
    %20 = arith.addf %17, %19 : vector<8x128xf32>
    %21 = tpu.iota {dimensions = array<i32: 0>} : vector<8x16xi32>
    %c2_i32 = arith.constant 2 : i32
    %22 = vector.broadcast %c2_i32 : i32 to vector<8x16xi32>
    %23 = arith.cmpi slt, %21, %22 : vector<8x16xi32>
    %24 = arith.extui %23 : vector<8x16xi1> to vector<8x16xi32>
    %25 = arith.sitofp %24 : vector<8x16xi32> to vector<8x16xf32>
    %cst_13 = arith.constant 1.000000e+00 : f32
    %26 = vector.broadcast %cst_13 : f32 to vector<8x16xf32>
    %27 = arith.addf %26, %8 : vector<8x16xf32>
    %28 = arith.mulf %7, %7 : vector<8x16xf32>
    %29 = arith.subf %27, %28 : vector<8x16xf32>
    %30 = math.exp %8 : vector<8x16xf32>
    %31 = arith.subf %29, %30 : vector<8x16xf32>
    %32 = arith.mulf %25, %31 : vector<8x16xf32>
    %33 = vector.shape_cast %32 : vector<8x16xf32> to vector<1x8x16xf32>
    %cst_14 = arith.constant dense<0.000000e+00> : vector<1xf32>
    %34 = vector.multi_reduction <add>, %33, %cst_14 [1, 2] : vector<1x8x16xf32> to vector<1xf32>
    %35 = vector.shape_cast %34 : vector<1xf32> to vector<1x1x1xf32>
    %36 = vector.extract %35[0, 0, 0] : f32 from vector<1x1x1xf32>
    %cst_15 = arith.constant -5.000000e-01 : f32
    %37 = arith.mulf %cst_15, %36 : f32
    %c0_16 = arith.constant 0 : index
    %c0_17 = arith.constant 0 : index
    %38 = memref.load %arg16[%c0_16, %c0_17] : memref<1x1xf32, #tpu.memory_space<smem>>
    memref.store %37, %arg16[%c0_16, %c0_17] : memref<1x1xf32, #tpu.memory_space<smem>>
    %c0_18 = arith.constant 0 : index
    %c0_19 = arith.constant 0 : index
    %39 = vector.load %arg10[%c0_18, %c0_19] : memref<1x384xf32, #tpu.memory_space<vmem>>, vector<1x384xf32>
    %c0_20 = arith.constant 0 : index
    %c0_21 = arith.constant 0 : index
    %40 = vector.load %arg11[%c0_20, %c0_21] : memref<1x384xf32, #tpu.memory_space<vmem>>, vector<1x384xf32>
    %c0_22 = arith.constant 0 : index
    %c0_23 = arith.constant 0 : index
    %41 = vector.load %arg13[%c0_22, %c0_23] : memref<1x128xf32, #tpu.memory_space<vmem>>, vector<1x128xf32>
    %c0_24 = arith.constant 0 : index
    %c0_25 = arith.constant 0 : index
    %c0_26 = arith.constant 0 : index
    %42 = vector.load %arg1[%c0_24, %c0_25, %c0_26] : memref<5x8x128xbf16, #tpu.memory_space<vmem>>, vector<1x8x128xbf16>
    %43 = vector.shape_cast %42 : vector<1x8x128xbf16> to vector<8x128xbf16>
    %c0_27 = arith.constant 0 : index
    %c0_28 = arith.constant 0 : index
    %44 = vector.load %arg8[%c0_27, %c0_28] : memref<128x384xbf16, #tpu.memory_space<vmem>>, vector<128x384xbf16>
    %cst_29 = arith.constant dense<0.000000e+00> : vector<8x384xf32>
    %45 = tpu.matmul %43, %44, %cst_29 {dimension_numbers = #tpu.dot_dimension_numbers<[1], [0], [0], [1], [0, 0, 1, 1], [], []>} : vector<8x128xbf16>, vector<128x384xbf16>, vector<8x384xf32> -> vector<8x384xf32>
    %46 = vector.broadcast %39 : vector<1x384xf32> to vector<8x384xf32>
    %47 = arith.addf %45, %46 : vector<8x384xf32>
    %48 = arith.truncf %20 : vector<8x128xf32> to vector<8x128xbf16>
    %c0_30 = arith.constant 0 : index
    %c0_31 = arith.constant 0 : index
    %49 = vector.load %arg9[%c0_30, %c0_31] : memref<128x384xbf16, #tpu.memory_space<vmem>>, vector<128x384xbf16>
    %cst_32 = arith.constant dense<0.000000e+00> : vector<8x384xf32>
    %50 = tpu.matmul %48, %49, %cst_32 {dimension_numbers = #tpu.dot_dimension_numbers<[1], [0], [0], [1], [0, 0, 1, 1], [], []>} : vector<8x128xbf16>, vector<128x384xbf16>, vector<8x384xf32> -> vector<8x384xf32>
    %51 = vector.broadcast %40 : vector<1x384xf32> to vector<8x384xf32>
    %52 = arith.addf %50, %51 : vector<8x384xf32>
    %53 = vector.extract_strided_slice %47 {offsets = [0, 0], sizes = [8, 128], strides = [1, 1]} : vector<8x384xf32> to vector<8x128xf32>
    %54 = vector.extract_strided_slice %52 {offsets = [0, 0], sizes = [8, 128], strides = [1, 1]} : vector<8x384xf32> to vector<8x128xf32>
    %55 = arith.addf %53, %54 : vector<8x128xf32>
    %56 = arith.negf %55 : vector<8x128xf32>
    %57 = math.exp %56 : vector<8x128xf32>
    %cst_33 = arith.constant 1.000000e+00 : f32
    %58 = vector.broadcast %cst_33 : f32 to vector<8x128xf32>
    %59 = arith.addf %58, %57 : vector<8x128xf32>
    %60 = arith.divf %58, %59 : vector<8x128xf32>
    %61 = vector.extract_strided_slice %47 {offsets = [0, 128], sizes = [8, 128], strides = [1, 1]} : vector<8x384xf32> to vector<8x128xf32>
    %62 = vector.extract_strided_slice %52 {offsets = [0, 128], sizes = [8, 128], strides = [1, 1]} : vector<8x384xf32> to vector<8x128xf32>
    %63 = arith.addf %61, %62 : vector<8x128xf32>
    %64 = arith.negf %63 : vector<8x128xf32>
    %65 = math.exp %64 : vector<8x128xf32>
    %cst_34 = arith.constant 1.000000e+00 : f32
    %66 = vector.broadcast %cst_34 : f32 to vector<8x128xf32>
    %67 = arith.addf %66, %65 : vector<8x128xf32>
    %68 = arith.divf %66, %67 : vector<8x128xf32>
    %69 = vector.extract_strided_slice %47 {offsets = [0, 256], sizes = [8, 128], strides = [1, 1]} : vector<8x384xf32> to vector<8x128xf32>
    %70 = vector.extract_strided_slice %52 {offsets = [0, 256], sizes = [8, 128], strides = [1, 1]} : vector<8x384xf32> to vector<8x128xf32>
    %71 = arith.mulf %60, %70 : vector<8x128xf32>
    %72 = arith.addf %69, %71 : vector<8x128xf32>
    %73 = math.tanh %72 : vector<8x128xf32>
    %cst_35 = arith.constant 1.000000e+00 : f32
    %74 = vector.broadcast %cst_35 : f32 to vector<8x128xf32>
    %75 = arith.subf %74, %68 : vector<8x128xf32>
    %76 = arith.mulf %75, %73 : vector<8x128xf32>
    %77 = arith.mulf %68, %20 : vector<8x128xf32>
    %78 = arith.addf %76, %77 : vector<8x128xf32>
    %79 = arith.truncf %78 : vector<8x128xf32> to vector<8x128xbf16>
    %c0_36 = arith.constant 0 : index
    %c0_37 = arith.constant 0 : index
    %80 = vector.load %arg12[%c0_36, %c0_37] : memref<128x128xbf16, #tpu.memory_space<vmem>>, vector<128x128xbf16>
    %cst_38 = arith.constant dense<0.000000e+00> : vector<8x128xf32>
    %81 = tpu.matmul %79, %80, %cst_38 {dimension_numbers = #tpu.dot_dimension_numbers<[1], [0], [0], [1], [0, 0, 1, 1], [], []>} : vector<8x128xbf16>, vector<128x128xbf16>, vector<8x128xf32> -> vector<8x128xf32>
    %82 = vector.broadcast %41 : vector<1x128xf32> to vector<8x128xf32>
    %83 = arith.addf %81, %82 : vector<8x128xf32>
    %cst_39 = arith.constant dense<0xFF800000> : vector<8xf32>
    %84 = vector.multi_reduction <maximumf>, %83, %cst_39 [1] : vector<8x128xf32> to vector<8xf32>
    %85 = vector.shape_cast %84 : vector<8xf32> to vector<8x1xf32>
    %86 = vector.broadcast %85 : vector<8x1xf32> to vector<8x128xf32>
    %87 = arith.subf %83, %86 : vector<8x128xf32>
    %88 = math.exp %87 : vector<8x128xf32>
    %cst_40 = arith.constant dense<0.000000e+00> : vector<8xf32>
    %89 = vector.multi_reduction <add>, %88, %cst_40 [1] : vector<8x128xf32> to vector<8xf32>
    %90 = vector.shape_cast %89 : vector<8xf32> to vector<8x1xf32>
    %91 = math.log %90 : vector<8x1xf32>
    %92 = arith.addf %91, %85 : vector<8x1xf32>
    %93 = vector.broadcast %92 : vector<8x1xf32> to vector<8x128xf32>
    %94 = arith.subf %83, %93 : vector<8x128xf32>
    %c0_41 = arith.constant 0 : index
    %c0_42 = arith.constant 0 : index
    %c0_43 = arith.constant 0 : index
    %95 = vector.load %arg14[%c0_41, %c0_42, %c0_43] : memref<5x8x128xf32, #tpu.memory_space<vmem>>, vector<1x8x128xf32>
    %96 = vector.shape_cast %95 : vector<1x8x128xf32> to vector<8x128xf32>
    %97 = vector.shape_cast %94 : vector<8x128xf32> to vector<1x8x128xf32>
    tpu.vector_store %arg14[%c0_41, %c0_42, %c0_43], %97 {strides = array<i32>} : memref<5x8x128xf32, #tpu.memory_space<vmem>>, vector<1x8x128xf32>,
    %c1 = arith.constant 1 : index
    %c0_44 = arith.constant 0 : index
    %c0_45 = arith.constant 0 : index
    %98 = vector.load %arg1[%c1, %c0_44, %c0_45] : memref<5x8x128xbf16, #tpu.memory_space<vmem>>, vector<1x8x128xbf16>
    %99 = vector.shape_cast %98 : vector<1x8x128xbf16> to vector<8x128xbf16>
    %c0_46 = arith.constant 0 : index
    %c0_47 = arith.constant 0 : index
    %100 = vector.load %arg8[%c0_46, %c0_47] : memref<128x384xbf16, #tpu.memory_space<vmem>>, vector<128x384xbf16>
    %cst_48 = arith.constant dense<0.000000e+00> : vector<8x384xf32>
    %101 = tpu.matmul %99, %100, %cst_48 {dimension_numbers = #tpu.dot_dimension_numbers<[1], [0], [0], [1], [0, 0, 1, 1], [], []>} : vector<8x128xbf16>, vector<128x384xbf16>, vector<8x384xf32> -> vector<8x384xf32>
    %102 = vector.broadcast %39 : vector<1x384xf32> to vector<8x384xf32>
    %103 = arith.addf %101, %102 : vector<8x384xf32>
    %104 = arith.truncf %78 : vector<8x128xf32> to vector<8x128xbf16>
    %c0_49 = arith.constant 0 : index
    %c0_50 = arith.constant 0 : index
    %105 = vector.load %arg9[%c0_49, %c0_50] : memref<128x384xbf16, #tpu.memory_space<vmem>>, vector<128x384xbf16>
    %cst_51 = arith.constant dense<0.000000e+00> : vector<8x384xf32>
    %106 = tpu.matmul %104, %105, %cst_51 {dimension_numbers = #tpu.dot_dimension_numbers<[1], [0], [0], [1], [0, 0, 1, 1], [], []>} : vector<8x128xbf16>, vector<128x384xbf16>, vector<8x384xf32> -> vector<8x384xf32>
    %107 = vector.broadcast %40 : vector<1x384xf32> to vector<8x384xf32>
    %108 = arith.addf %106, %107 : vector<8x384xf32>
    %109 = vector.extract_strided_slice %103 {offsets = [0, 0], sizes = [8, 128], strides = [1, 1]} : vector<8x384xf32> to vector<8x128xf32>
    %110 = vector.extract_strided_slice %108 {offsets = [0, 0], sizes = [8, 128], strides = [1, 1]} : vector<8x384xf32> to vector<8x128xf32>
    %111 = arith.addf %109, %110 : vector<8x128xf32>
    %112 = arith.negf %111 : vector<8x128xf32>
    %113 = math.exp %112 : vector<8x128xf32>
    %cst_52 = arith.constant 1.000000e+00 : f32
    %114 = vector.broadcast %cst_52 : f32 to vector<8x128xf32>
    %115 = arith.addf %114, %113 : vector<8x128xf32>
    %116 = arith.divf %114, %115 : vector<8x128xf32>
    %117 = vector.extract_strided_slice %103 {offsets = [0, 128], sizes = [8, 128], strides = [1, 1]} : vector<8x384xf32> to vector<8x128xf32>
    %118 = vector.extract_strided_slice %108 {offsets = [0, 128], sizes = [8, 128], strides = [1, 1]} : vector<8x384xf32> to vector<8x128xf32>
    %119 = arith.addf %117, %118 : vector<8x128xf32>
    %120 = arith.negf %119 : vector<8x128xf32>
    %121 = math.exp %120 : vector<8x128xf32>
    %cst_53 = arith.constant 1.000000e+00 : f32
    %122 = vector.broadcast %cst_53 : f32 to vector<8x128xf32>
    %123 = arith.addf %122, %121 : vector<8x128xf32>
    %124 = arith.divf %122, %123 : vector<8x128xf32>
    %125 = vector.extract_strided_slice %103 {offsets = [0, 256], sizes = [8, 128], strides = [1, 1]} : vector<8x384xf32> to vector<8x128xf32>
    %126 = vector.extract_strided_slice %108 {offsets = [0, 256], sizes = [8, 128], strides = [1, 1]} : vector<8x384xf32> to vector<8x128xf32>
    %127 = arith.mulf %116, %126 : vector<8x128xf32>
    %128 = arith.addf %125, %127 : vector<8x128xf32>
    %129 = math.tanh %128 : vector<8x128xf32>
    %cst_54 = arith.constant 1.000000e+00 : f32
    %130 = vector.broadcast %cst_54 : f32 to vector<8x128xf32>
    %131 = arith.subf %130, %124 : vector<8x128xf32>
    %132 = arith.mulf %131, %129 : vector<8x128xf32>
    %133 = arith.mulf %124, %78 : vector<8x128xf32>
    %134 = arith.addf %132, %133 : vector<8x128xf32>
    %135 = arith.truncf %134 : vector<8x128xf32> to vector<8x128xbf16>
    %c0_55 = arith.constant 0 : index
    %c0_56 = arith.constant 0 : index
    %136 = vector.load %arg12[%c0_55, %c0_56] : memref<128x128xbf16, #tpu.memory_space<vmem>>, vector<128x128xbf16>
    %cst_57 = arith.constant dense<0.000000e+00> : vector<8x128xf32>
    %137 = tpu.matmul %135, %136, %cst_57 {dimension_numbers = #tpu.dot_dimension_numbers<[1], [0], [0], [1], [0, 0, 1, 1], [], []>} : vector<8x128xbf16>, vector<128x128xbf16>, vector<8x128xf32> -> vector<8x128xf32>
    %138 = vector.broadcast %41 : vector<1x128xf32> to vector<8x128xf32>
    %139 = arith.addf %137, %138 : vector<8x128xf32>
    %cst_58 = arith.constant dense<0xFF800000> : vector<8xf32>
    %140 = vector.multi_reduction <maximumf>, %139, %cst_58 [1] : vector<8x128xf32> to vector<8xf32>
    %141 = vector.shape_cast %140 : vector<8xf32> to vector<8x1xf32>
    %142 = vector.broadcast %141 : vector<8x1xf32> to vector<8x128xf32>
    %143 = arith.subf %139, %142 : vector<8x128xf32>
    %144 = math.exp %143 : vector<8x128xf32>
    %cst_59 = arith.constant dense<0.000000e+00> : vector<8xf32>
    %145 = vector.multi_reduction <add>, %144, %cst_59 [1] : vector<8x128xf32> to vector<8xf32>
    %146 = vector.shape_cast %145 : vector<8xf32> to vector<8x1xf32>
    %147 = math.log %146 : vector<8x1xf32>
    %148 = arith.addf %147, %141 : vector<8x1xf32>
    %149 = vector.broadcast %148 : vector<8x1xf32> to vector<8x128xf32>
    %150 = arith.subf %139, %149 : vector<8x128xf32>
    %c1_60 = arith.constant 1 : index
    %c0_61 = arith.constant 0 : index
    %c0_62 = arith.constant 0 : index
    %151 = vector.load %arg14[%c1_60, %c0_61, %c0_62] : memref<5x8x128xf32, #tpu.memory_space<vmem>>, vector<1x8x128xf32>
    %152 = vector.shape_cast %151 : vector<1x8x128xf32> to vector<8x128xf32>
    %153 = vector.shape_cast %150 : vector<8x128xf32> to vector<1x8x128xf32>
    tpu.vector_store %arg14[%c1_60, %c0_61, %c0_62], %153 {strides = array<i32>} : memref<5x8x128xf32, #tpu.memory_space<vmem>>, vector<1x8x128xf32>,
    %c2 = arith.constant 2 : index
    %c0_63 = arith.constant 0 : index
    %c0_64 = arith.constant 0 : index
    %154 = vector.load %arg1[%c2, %c0_63, %c0_64] : memref<5x8x128xbf16, #tpu.memory_space<vmem>>, vector<1x8x128xbf16>
    %155 = vector.shape_cast %154 : vector<1x8x128xbf16> to vector<8x128xbf16>
    %c0_65 = arith.constant 0 : index
    %c0_66 = arith.constant 0 : index
    %156 = vector.load %arg8[%c0_65, %c0_66] : memref<128x384xbf16, #tpu.memory_space<vmem>>, vector<128x384xbf16>
    %cst_67 = arith.constant dense<0.000000e+00> : vector<8x384xf32>
    %157 = tpu.matmul %155, %156, %cst_67 {dimension_numbers = #tpu.dot_dimension_numbers<[1], [0], [0], [1], [0, 0, 1, 1], [], []>} : vector<8x128xbf16>, vector<128x384xbf16>, vector<8x384xf32> -> vector<8x384xf32>
    %158 = vector.broadcast %39 : vector<1x384xf32> to vector<8x384xf32>
    %159 = arith.addf %157, %158 : vector<8x384xf32>
    %160 = arith.truncf %134 : vector<8x128xf32> to vector<8x128xbf16>
    %c0_68 = arith.constant 0 : index
    %c0_69 = arith.constant 0 : index
    %161 = vector.load %arg9[%c0_68, %c0_69] : memref<128x384xbf16, #tpu.memory_space<vmem>>, vector<128x384xbf16>
    %cst_70 = arith.constant dense<0.000000e+00> : vector<8x384xf32>
    %162 = tpu.matmul %160, %161, %cst_70 {dimension_numbers = #tpu.dot_dimension_numbers<[1], [0], [0], [1], [0, 0, 1, 1], [], []>} : vector<8x128xbf16>, vector<128x384xbf16>, vector<8x384xf32> -> vector<8x384xf32>
    %163 = vector.broadcast %40 : vector<1x384xf32> to vector<8x384xf32>
    %164 = arith.addf %162, %163 : vector<8x384xf32>
    %165 = vector.extract_strided_slice %159 {offsets = [0, 0], sizes = [8, 128], strides = [1, 1]} : vector<8x384xf32> to vector<8x128xf32>
    %166 = vector.extract_strided_slice %164 {offsets = [0, 0], sizes = [8, 128], strides = [1, 1]} : vector<8x384xf32> to vector<8x128xf32>
    %167 = arith.addf %165, %166 : vector<8x128xf32>
    %168 = arith.negf %167 : vector<8x128xf32>
    %169 = math.exp %168 : vector<8x128xf32>
    %cst_71 = arith.constant 1.000000e+00 : f32
    %170 = vector.broadcast %cst_71 : f32 to vector<8x128xf32>
    %171 = arith.addf %170, %169 : vector<8x128xf32>
    %172 = arith.divf %170, %171 : vector<8x128xf32>
    %173 = vector.extract_strided_slice %159 {offsets = [0, 128], sizes = [8, 128], strides = [1, 1]} : vector<8x384xf32> to vector<8x128xf32>
    %174 = vector.extract_strided_slice %164 {offsets = [0, 128], sizes = [8, 128], strides = [1, 1]} : vector<8x384xf32> to vector<8x128xf32>
    %175 = arith.addf %173, %174 : vector<8x128xf32>
    %176 = arith.negf %175 : vector<8x128xf32>
    %177 = math.exp %176 : vector<8x128xf32>
    %cst_72 = arith.constant 1.000000e+00 : f32
    %178 = vector.broadcast %cst_72 : f32 to vector<8x128xf32>
    %179 = arith.addf %178, %177 : vector<8x128xf32>
    %180 = arith.divf %178, %179 : vector<8x128xf32>
    %181 = vector.extract_strided_slice %159 {offsets = [0, 256], sizes = [8, 128], strides = [1, 1]} : vector<8x384xf32> to vector<8x128xf32>
    %182 = vector.extract_strided_slice %164 {offsets = [0, 256], sizes = [8, 128], strides = [1, 1]} : vector<8x384xf32> to vector<8x128xf32>
    %183 = arith.mulf %172, %182 : vector<8x128xf32>
    %184 = arith.addf %181, %183 : vector<8x128xf32>
    %185 = math.tanh %184 : vector<8x128xf32>
    %cst_73 = arith.constant 1.000000e+00 : f32
    %186 = vector.broadcast %cst_73 : f32 to vector<8x128xf32>
    %187 = arith.subf %186, %180 : vector<8x128xf32>
    %188 = arith.mulf %187, %185 : vector<8x128xf32>
    %189 = arith.mulf %180, %134 : vector<8x128xf32>
    %190 = arith.addf %188, %189 : vector<8x128xf32>
    %191 = arith.truncf %190 : vector<8x128xf32> to vector<8x128xbf16>
    %c0_74 = arith.constant 0 : index
    %c0_75 = arith.constant 0 : index
    %192 = vector.load %arg12[%c0_74, %c0_75] : memref<128x128xbf16, #tpu.memory_space<vmem>>, vector<128x128xbf16>
    %cst_76 = arith.constant dense<0.000000e+00> : vector<8x128xf32>
    %193 = tpu.matmul %191, %192, %cst_76 {dimension_numbers = #tpu.dot_dimension_numbers<[1], [0], [0], [1], [0, 0, 1, 1], [], []>} : vector<8x128xbf16>, vector<128x128xbf16>, vector<8x128xf32> -> vector<8x128xf32>
    %194 = vector.broadcast %41 : vector<1x128xf32> to vector<8x128xf32>
    %195 = arith.addf %193, %194 : vector<8x128xf32>
    %cst_77 = arith.constant dense<0xFF800000> : vector<8xf32>
    %196 = vector.multi_reduction <maximumf>, %195, %cst_77 [1] : vector<8x128xf32> to vector<8xf32>
    %197 = vector.shape_cast %196 : vector<8xf32> to vector<8x1xf32>
    %198 = vector.broadcast %197 : vector<8x1xf32> to vector<8x128xf32>
    %199 = arith.subf %195, %198 : vector<8x128xf32>
    %200 = math.exp %199 : vector<8x128xf32>
    %cst_78 = arith.constant dense<0.000000e+00> : vector<8xf32>
    %201 = vector.multi_reduction <add>, %200, %cst_78 [1] : vector<8x128xf32> to vector<8xf32>
    %202 = vector.shape_cast %201 : vector<8xf32> to vector<8x1xf32>
    %203 = math.log %202 : vector<8x1xf32>
    %204 = arith.addf %203, %197 : vector<8x1xf32>
    %205 = vector.broadcast %204 : vector<8x1xf32> to vector<8x128xf32>
    %206 = arith.subf %195, %205 : vector<8x128xf32>
    %c2_79 = arith.constant 2 : index
    %c0_80 = arith.constant 0 : index
    %c0_81 = arith.constant 0 : index
    %207 = vector.load %arg14[%c2_79, %c0_80, %c0_81] : memref<5x8x128xf32, #tpu.memory_space<vmem>>, vector<1x8x128xf32>
    %208 = vector.shape_cast %207 : vector<1x8x128xf32> to vector<8x128xf32>
    %209 = vector.shape_cast %206 : vector<8x128xf32> to vector<1x8x128xf32>
    tpu.vector_store %arg14[%c2_79, %c0_80, %c0_81], %209 {strides = array<i32>} : memref<5x8x128xf32, #tpu.memory_space<vmem>>, vector<1x8x128xf32>,
    %c3 = arith.constant 3 : index
    %c0_82 = arith.constant 0 : index
    %c0_83 = arith.constant 0 : index
    %210 = vector.load %arg1[%c3, %c0_82, %c0_83] : memref<5x8x128xbf16, #tpu.memory_space<vmem>>, vector<1x8x128xbf16>
    %211 = vector.shape_cast %210 : vector<1x8x128xbf16> to vector<8x128xbf16>
    %c0_84 = arith.constant 0 : index
    %c0_85 = arith.constant 0 : index
    %212 = vector.load %arg8[%c0_84, %c0_85] : memref<128x384xbf16, #tpu.memory_space<vmem>>, vector<128x384xbf16>
    %cst_86 = arith.constant dense<0.000000e+00> : vector<8x384xf32>
    %213 = tpu.matmul %211, %212, %cst_86 {dimension_numbers = #tpu.dot_dimension_numbers<[1], [0], [0], [1], [0, 0, 1, 1], [], []>} : vector<8x128xbf16>, vector<128x384xbf16>, vector<8x384xf32> -> vector<8x384xf32>
    %214 = vector.broadcast %39 : vector<1x384xf32> to vector<8x384xf32>
    %215 = arith.addf %213, %214 : vector<8x384xf32>
    %216 = arith.truncf %190 : vector<8x128xf32> to vector<8x128xbf16>
    %c0_87 = arith.constant 0 : index
    %c0_88 = arith.constant 0 : index
    %217 = vector.load %arg9[%c0_87, %c0_88] : memref<128x384xbf16, #tpu.memory_space<vmem>>, vector<128x384xbf16>
    %cst_89 = arith.constant dense<0.000000e+00> : vector<8x384xf32>
    %218 = tpu.matmul %216, %217, %cst_89 {dimension_numbers = #tpu.dot_dimension_numbers<[1], [0], [0], [1], [0, 0, 1, 1], [], []>} : vector<8x128xbf16>, vector<128x384xbf16>, vector<8x384xf32> -> vector<8x384xf32>
    %219 = vector.broadcast %40 : vector<1x384xf32> to vector<8x384xf32>
    %220 = arith.addf %218, %219 : vector<8x384xf32>
    %221 = vector.extract_strided_slice %215 {offsets = [0, 0], sizes = [8, 128], strides = [1, 1]} : vector<8x384xf32> to vector<8x128xf32>
    %222 = vector.extract_strided_slice %220 {offsets = [0, 0], sizes = [8, 128], strides = [1, 1]} : vector<8x384xf32> to vector<8x128xf32>
    %223 = arith.addf %221, %222 : vector<8x128xf32>
    %224 = arith.negf %223 : vector<8x128xf32>
    %225 = math.exp %224 : vector<8x128xf32>
    %cst_90 = arith.constant 1.000000e+00 : f32
    %226 = vector.broadcast %cst_90 : f32 to vector<8x128xf32>
    %227 = arith.addf %226, %225 : vector<8x128xf32>
    %228 = arith.divf %226, %227 : vector<8x128xf32>
    %229 = vector.extract_strided_slice %215 {offsets = [0, 128], sizes = [8, 128], strides = [1, 1]} : vector<8x384xf32> to vector<8x128xf32>
    %230 = vector.extract_strided_slice %220 {offsets = [0, 128], sizes = [8, 128], strides = [1, 1]} : vector<8x384xf32> to vector<8x128xf32>
    %231 = arith.addf %229, %230 : vector<8x128xf32>
    %232 = arith.negf %231 : vector<8x128xf32>
    %233 = math.exp %232 : vector<8x128xf32>
    %cst_91 = arith.constant 1.000000e+00 : f32
    %234 = vector.broadcast %cst_91 : f32 to vector<8x128xf32>
    %235 = arith.addf %234, %233 : vector<8x128xf32>
    %236 = arith.divf %234, %235 : vector<8x128xf32>
    %237 = vector.extract_strided_slice %215 {offsets = [0, 256], sizes = [8, 128], strides = [1, 1]} : vector<8x384xf32> to vector<8x128xf32>
    %238 = vector.extract_strided_slice %220 {offsets = [0, 256], sizes = [8, 128], strides = [1, 1]} : vector<8x384xf32> to vector<8x128xf32>
    %239 = arith.mulf %228, %238 : vector<8x128xf32>
    %240 = arith.addf %237, %239 : vector<8x128xf32>
    %241 = math.tanh %240 : vector<8x128xf32>
    %cst_92 = arith.constant 1.000000e+00 : f32
    %242 = vector.broadcast %cst_92 : f32 to vector<8x128xf32>
    %243 = arith.subf %242, %236 : vector<8x128xf32>
    %244 = arith.mulf %243, %241 : vector<8x128xf32>
    %245 = arith.mulf %236, %190 : vector<8x128xf32>
    %246 = arith.addf %244, %245 : vector<8x128xf32>
    %247 = arith.truncf %246 : vector<8x128xf32> to vector<8x128xbf16>
    %c0_93 = arith.constant 0 : index
    %c0_94 = arith.constant 0 : index
    %248 = vector.load %arg12[%c0_93, %c0_94] : memref<128x128xbf16, #tpu.memory_space<vmem>>, vector<128x128xbf16>
    %cst_95 = arith.constant dense<0.000000e+00> : vector<8x128xf32>
    %249 = tpu.matmul %247, %248, %cst_95 {dimension_numbers = #tpu.dot_dimension_numbers<[1], [0], [0], [1], [0, 0, 1, 1], [], []>} : vector<8x128xbf16>, vector<128x128xbf16>, vector<8x128xf32> -> vector<8x128xf32>
    %250 = vector.broadcast %41 : vector<1x128xf32> to vector<8x128xf32>
    %251 = arith.addf %249, %250 : vector<8x128xf32>
    %cst_96 = arith.constant dense<0xFF800000> : vector<8xf32>
    %252 = vector.multi_reduction <maximumf>, %251, %cst_96 [1] : vector<8x128xf32> to vector<8xf32>
    %253 = vector.shape_cast %252 : vector<8xf32> to vector<8x1xf32>
    %254 = vector.broadcast %253 : vector<8x1xf32> to vector<8x128xf32>
    %255 = arith.subf %251, %254 : vector<8x128xf32>
    %256 = math.exp %255 : vector<8x128xf32>
    %cst_97 = arith.constant dense<0.000000e+00> : vector<8xf32>
    %257 = vector.multi_reduction <add>, %256, %cst_97 [1] : vector<8x128xf32> to vector<8xf32>
    %258 = vector.shape_cast %257 : vector<8xf32> to vector<8x1xf32>
    %259 = math.log %258 : vector<8x1xf32>
    %260 = arith.addf %259, %253 : vector<8x1xf32>
    %261 = vector.broadcast %260 : vector<8x1xf32> to vector<8x128xf32>
    %262 = arith.subf %251, %261 : vector<8x128xf32>
    %c3_98 = arith.constant 3 : index
    %c0_99 = arith.constant 0 : index
    %c0_100 = arith.constant 0 : index
    %263 = vector.load %arg14[%c3_98, %c0_99, %c0_100] : memref<5x8x128xf32, #tpu.memory_space<vmem>>, vector<1x8x128xf32>
    %264 = vector.shape_cast %263 : vector<1x8x128xf32> to vector<8x128xf32>
    %265 = vector.shape_cast %262 : vector<8x128xf32> to vector<1x8x128xf32>
    tpu.vector_store %arg14[%c3_98, %c0_99, %c0_100], %265 {strides = array<i32>} : memref<5x8x128xf32, #tpu.memory_space<vmem>>, vector<1x8x128xf32>,
    %c4 = arith.constant 4 : index
    %c0_101 = arith.constant 0 : index
    %c0_102 = arith.constant 0 : index
    %266 = vector.load %arg1[%c4, %c0_101, %c0_102] : memref<5x8x128xbf16, #tpu.memory_space<vmem>>, vector<1x8x128xbf16>
    %267 = vector.shape_cast %266 : vector<1x8x128xbf16> to vector<8x128xbf16>
    %c0_103 = arith.constant 0 : index
    %c0_104 = arith.constant 0 : index
    %268 = vector.load %arg8[%c0_103, %c0_104] : memref<128x384xbf16, #tpu.memory_space<vmem>>, vector<128x384xbf16>
    %cst_105 = arith.constant dense<0.000000e+00> : vector<8x384xf32>
    %269 = tpu.matmul %267, %268, %cst_105 {dimension_numbers = #tpu.dot_dimension_numbers<[1], [0], [0], [1], [0, 0, 1, 1], [], []>} : vector<8x128xbf16>, vector<128x384xbf16>, vector<8x384xf32> -> vector<8x384xf32>
    %270 = vector.broadcast %39 : vector<1x384xf32> to vector<8x384xf32>
    %271 = arith.addf %269, %270 : vector<8x384xf32>
    %272 = arith.truncf %246 : vector<8x128xf32> to vector<8x128xbf16>
    %c0_106 = arith.constant 0 : index
    %c0_107 = arith.constant 0 : index
    %273 = vector.load %arg9[%c0_106, %c0_107] : memref<128x384xbf16, #tpu.memory_space<vmem>>, vector<128x384xbf16>
    %cst_108 = arith.constant dense<0.000000e+00> : vector<8x384xf32>
    %274 = tpu.matmul %272, %273, %cst_108 {dimension_numbers = #tpu.dot_dimension_numbers<[1], [0], [0], [1], [0, 0, 1, 1], [], []>} : vector<8x128xbf16>, vector<128x384xbf16>, vector<8x384xf32> -> vector<8x384xf32>
    %275 = vector.broadcast %40 : vector<1x384xf32> to vector<8x384xf32>
    %276 = arith.addf %274, %275 : vector<8x384xf32>
    %277 = vector.extract_strided_slice %271 {offsets = [0, 0], sizes = [8, 128], strides = [1, 1]} : vector<8x384xf32> to vector<8x128xf32>
    %278 = vector.extract_strided_slice %276 {offsets = [0, 0], sizes = [8, 128], strides = [1, 1]} : vector<8x384xf32> to vector<8x128xf32>
    %279 = arith.addf %277, %278 : vector<8x128xf32>
    %280 = arith.negf %279 : vector<8x128xf32>
    %281 = math.exp %280 : vector<8x128xf32>
    %cst_109 = arith.constant 1.000000e+00 : f32
    %282 = vector.broadcast %cst_109 : f32 to vector<8x128xf32>
    %283 = arith.addf %282, %281 : vector<8x128xf32>
    %284 = arith.divf %282, %283 : vector<8x128xf32>
    %285 = vector.extract_strided_slice %271 {offsets = [0, 128], sizes = [8, 128], strides = [1, 1]} : vector<8x384xf32> to vector<8x128xf32>
    %286 = vector.extract_strided_slice %276 {offsets = [0, 128], sizes = [8, 128], strides = [1, 1]} : vector<8x384xf32> to vector<8x128xf32>
    %287 = arith.addf %285, %286 : vector<8x128xf32>
    %288 = arith.negf %287 : vector<8x128xf32>
    %289 = math.exp %288 : vector<8x128xf32>
    %cst_110 = arith.constant 1.000000e+00 : f32
    %290 = vector.broadcast %cst_110 : f32 to vector<8x128xf32>
    %291 = arith.addf %290, %289 : vector<8x128xf32>
    %292 = arith.divf %290, %291 : vector<8x128xf32>
    %293 = vector.extract_strided_slice %271 {offsets = [0, 256], sizes = [8, 128], strides = [1, 1]} : vector<8x384xf32> to vector<8x128xf32>
    %294 = vector.extract_strided_slice %276 {offsets = [0, 256], sizes = [8, 128], strides = [1, 1]} : vector<8x384xf32> to vector<8x128xf32>
    %295 = arith.mulf %284, %294 : vector<8x128xf32>
    %296 = arith.addf %293, %295 : vector<8x128xf32>
    %297 = math.tanh %296 : vector<8x128xf32>
    %cst_111 = arith.constant 1.000000e+00 : f32
    %298 = vector.broadcast %cst_111 : f32 to vector<8x128xf32>
    %299 = arith.subf %298, %292 : vector<8x128xf32>
    %300 = arith.mulf %299, %297 : vector<8x128xf32>
    %301 = arith.mulf %292, %246 : vector<8x128xf32>
    %302 = arith.addf %300, %301 : vector<8x128xf32>
    %303 = arith.truncf %302 : vector<8x128xf32> to vector<8x128xbf16>
    %c0_112 = arith.constant 0 : index
    %c0_113 = arith.constant 0 : index
    %304 = vector.load %arg12[%c0_112, %c0_113] : memref<128x128xbf16, #tpu.memory_space<vmem>>, vector<128x128xbf16>
    %cst_114 = arith.constant dense<0.000000e+00> : vector<8x128xf32>
    %305 = tpu.matmul %303, %304, %cst_114 {dimension_numbers = #tpu.dot_dimension_numbers<[1], [0], [0], [1], [0, 0, 1, 1], [], []>} : vector<8x128xbf16>, vector<128x128xbf16>, vector<8x128xf32> -> vector<8x128xf32>
    %306 = vector.broadcast %41 : vector<1x128xf32> to vector<8x128xf32>
    %307 = arith.addf %305, %306 : vector<8x128xf32>
    %cst_115 = arith.constant dense<0xFF800000> : vector<8xf32>
    %308 = vector.multi_reduction <maximumf>, %307, %cst_115 [1] : vector<8x128xf32> to vector<8xf32>
    %309 = vector.shape_cast %308 : vector<8xf32> to vector<8x1xf32>
    %310 = vector.broadcast %309 : vector<8x1xf32> to vector<8x128xf32>
    %311 = arith.subf %307, %310 : vector<8x128xf32>
    %312 = math.exp %311 : vector<8x128xf32>
    %cst_116 = arith.constant dense<0.000000e+00> : vector<8xf32>
    %313 = vector.multi_reduction <add>, %312, %cst_116 [1] : vector<8x128xf32> to vector<8xf32>
    %314 = vector.shape_cast %313 : vector<8xf32> to vector<8x1xf32>
    %315 = math.log %314 : vector<8x1xf32>
    %316 = arith.addf %315, %309 : vector<8x1xf32>
    %317 = vector.broadcast %316 : vector<8x1xf32> to vector<8x128xf32>
    %318 = arith.subf %307, %317 : vector<8x128xf32>
    %c4_117 = arith.constant 4 : index
    %c0_118 = arith.constant 0 : index
    %c0_119 = arith.constant 0 : index
    %319 = vector.load %arg14[%c4_117, %c0_118, %c0_119] : memref<5x8x128xf32, #tpu.memory_space<vmem>>, vector<1x8x128xf32>
    %320 = vector.shape_cast %319 : vector<1x8x128xf32> to vector<8x128xf32>
    %321 = vector.shape_cast %318 : vector<8x128xf32> to vector<1x8x128xf32>
    tpu.vector_store %arg14[%c4_117, %c0_118, %c0_119], %321 {strides = array<i32>} : memref<5x8x128xf32, #tpu.memory_space<vmem>>, vector<1x8x128xf32>,
    %c0_120 = arith.constant 0 : index
    %c0_121 = arith.constant 0 : index
    %322 = vector.load %arg15[%c0_120, %c0_121] : memref<8x128xf32, #tpu.memory_space<vmem>>, vector<8x128xf32>
    tpu.vector_store %arg15[%c0_120, %c0_121], %302 {strides = array<i32>} : memref<8x128xf32, #tpu.memory_space<vmem>>, vector<8x128xf32>,
    return
  }
  func.func @transform_0(%arg0: i32) -> (i32, i32, i32) {
    %c0_i32 = arith.constant 0 : i32
    %c0_i32_0 = arith.constant 0 : i32
    %c0_i32_1 = arith.constant 0 : i32
    %c0_i32_2 = arith.constant 0 : i32
    return %c0_i32, %c0_i32_0, %c0_i32_1 : i32, i32, i32
  }
  func.func @transform_1(%arg0: i32) -> (i32, i32) {
    %c0_i32 = arith.constant 0 : i32
    %c0_i32_0 = arith.constant 0 : i32
    %c0_i32_1 = arith.constant 0 : i32
    return %c0_i32, %c0_i32_0 : i32, i32
  }
  func.func @transform_2(%arg0: i32) -> (i32, i32) {
    %c0_i32 = arith.constant 0 : i32
    %c0_i32_0 = arith.constant 0 : i32
    %c0_i32_1 = arith.constant 0 : i32
    return %c0_i32, %c0_i32_0 : i32, i32
  }
  func.func @transform_3(%arg0: i32) -> (i32, i32) {
    %c0_i32 = arith.constant 0 : i32
    %c0_i32_0 = arith.constant 0 : i32
    %c0_i32_1 = arith.constant 0 : i32
    return %c0_i32, %c0_i32_0 : i32, i32
  }
  func.func @transform_4(%arg0: i32) -> (i32, i32) {
    %c0_i32 = arith.constant 0 : i32
    %c0_i32_0 = arith.constant 0 : i32
    %c0_i32_1 = arith.constant 0 : i32
    return %c0_i32, %c0_i32_0 : i32, i32
  }
  func.func @transform_5(%arg0: i32) -> (i32, i32) {
    %c0_i32 = arith.constant 0 : i32
    %c0_i32_0 = arith.constant 0 : i32
    %c0_i32_1 = arith.constant 0 : i32
    return %c0_i32, %c0_i32_0 : i32, i32
  }
  func.func @transform_6(%arg0: i32) -> (i32, i32) {
    %c0_i32 = arith.constant 0 : i32
    %c0_i32_0 = arith.constant 0 : i32
    %c0_i32_1 = arith.constant 0 : i32
    return %c0_i32, %c0_i32_0 : i32, i32
  }
  func.func @transform_7(%arg0: i32) -> (i32, i32) {
    %c0_i32 = arith.constant 0 : i32
    %c0_i32_0 = arith.constant 0 : i32
    %c0_i32_1 = arith.constant 0 : i32
    return %c0_i32, %c0_i32_0 : i32, i32
  }
  func.func @transform_8(%arg0: i32) -> (i32, i32) {
    %c0_i32 = arith.constant 0 : i32
    %c0_i32_0 = arith.constant 0 : i32
    %c0_i32_1 = arith.constant 0 : i32
    return %c0_i32, %c0_i32_0 : i32, i32
  }
  func.func @transform_9(%arg0: i32) -> (i32, i32) {
    %c0_i32 = arith.constant 0 : i32
    %c0_i32_0 = arith.constant 0 : i32
    %c0_i32_1 = arith.constant 0 : i32
    return %c0_i32, %c0_i32_0 : i32, i32
  }
  func.func @transform_10(%arg0: i32) -> (i32, i32) {
    %c0_i32 = arith.constant 0 : i32
    %c0_i32_0 = arith.constant 0 : i32
    %c0_i32_1 = arith.constant 0 : i32
    return %c0_i32, %c0_i32_0 : i32, i32
  }
  func.func @transform_11(%arg0: i32) -> (i32, i32) {
    %c0_i32 = arith.constant 0 : i32
    %c0_i32_0 = arith.constant 0 : i32
    %c0_i32_1 = arith.constant 0 : i32
    return %c0_i32, %c0_i32_0 : i32, i32
  }
  func.func @transform_12(%arg0: i32) -> (i32, i32) {
    %c0_i32 = arith.constant 0 : i32
    %c0_i32_0 = arith.constant 0 : i32
    %c0_i32_1 = arith.constant 0 : i32
    return %c0_i32, %c0_i32_0 : i32, i32
  }
  func.func @transform_13(%arg0: i32) -> (i32, i32, i32) {
    %c0_i32 = arith.constant 0 : i32
    %c0_i32_0 = arith.constant 0 : i32
    %c0_i32_1 = arith.constant 0 : i32
    %c0_i32_2 = arith.constant 0 : i32
    return %c0_i32, %c0_i32_0, %c0_i32_1 : i32, i32, i32
  }
  func.func @transform_14(%arg0: i32) -> (i32, i32) {
    %c0_i32 = arith.constant 0 : i32
    %c0_i32_0 = arith.constant 0 : i32
    %c0_i32_1 = arith.constant 0 : i32
    return %c0_i32, %c0_i32_0 : i32, i32
  }
  func.func @transform_15(%arg0: i32) -> (i32, i32) {
    %c0_i32 = arith.constant 0 : i32
    %c0_i32_0 = arith.constant 0 : i32
    %c0_i32_1 = arith.constant 0 : i32
    return %c0_i32, %c0_i32_0 : i32, i32
  }
}

</mosaic_0001>

<bundles_post_ra>
// kernel: tpu_custom_call.1
= control target key start
LH: loop header
LB: loop body
LE: loop exit
PB: predicated region body
PF: predicated region fallthrough
CT: control target
= control target key end

     0   :  { %21 = vsyncpa [#allocation3], 0  ;;  %s5752_s0 = inlined_call_operand.hbm [shape: bf16[5,8,128], index: 0, kind: input, shape index: {}]   ;;  %s5753_s1 = inlined_call_operand.hbm [shape: f32[8,64], index: 1, kind: input, shape index: {}]   ;;  %s5754_s2 = inlined_call_operand.hbm [shape: f32[8,16], index: 2, kind: input, shape index: {}]   ;;  %s5755_s3 = inlined_call_operand.vmem [shape: bf16[64,32], index: 3, kind: input, shape index: {}]   ;;  %s5756_s4 = inlined_call_operand.vmem [shape: f32[1,32], index: 4, kind: input, shape index: {}]   ;;  %s5757_s5 = inlined_call_operand.hbm [shape: bf16[16,128], index: 5, kind: input, shape index: {}]   ;;  %s5758_s6 = inlined_call_operand.hbm [shape: f32[1,128], index: 6, kind: input, shape index: {}]   ;;  %s5759_s7 = inlined_call_operand.hbm [shape: bf16[128,384], index: 7, kind: input, shape index: {}]   ;;  %s5760_s8 = inlined_call_operand.hbm [shape: bf16[128,384], index: 8, kind: input, shape index: {}]   ;;  %s5761_s9 = inlined_call_operand.vmem [shape: f32[1,384], index: 9, kind: input, shape index: {}]   ;;  %s5762_s10 = inlined_call_operand.hbm [shape: f32[1,384], index: 10, kind: input, shape index: {}]   ;;  %s5763_s11 = inlined_call_operand.vmem [shape: bf16[128,128], index: 11, kind: input, shape index: {}]   ;;  %s5764_s12 = inlined_call_operand.vmem [shape: f32[1,128], index: 12, kind: input, shape index: {}]   ;;  %s5765_s13 = inlined_call_operand.hbm [shape: f32[5,8,128], index: 13, kind: output, shape index: {0}]   ;;  %s5766_s14 = inlined_call_operand.hbm [shape: f32[8,128], index: 14, kind: output, shape index: {1}]   ;;  %s5767_s15 = inlined_call_operand.hbm [shape: f32[1,1], index: 15, kind: output, shape index: {2}]  }
   0x1   :  { %22 = vsyncpa [#allocation7], 0 }
   0x2   :  { %23 = vsyncpa [#allocation10], 0 }
   0x3   :  { %24 = vsyncpa [#allocation13], 0 }
   0x4   :  { %25 = vsyncpa [#allocation16], 0 }
   0x5   :  { %26 = vsyncpa [#allocation4], 0 }
   0x6   :  { %27 = vsyncpa [#allocation19], 0 }
   0x7   :  { %28 = vsyncpa [#allocation5], 0  ;;  %s4849_s18 = smov [#allocation6]  }
   0x8   :  { %s47_s19 = sshll.u32 %s4849_s18, 4  ;;  %s48_s19 = int_to_ptr.vmem [resolvable:$true] %s47_s19 }
   0x9   :  { %s4633_s20 = scalar_lea.vmem %s48_s19, 128  ;;  %p4638_p1 = scmp.lt.s32.totalorder %s48_s19, %s48_s19 }
   0xa   :  { %p4634_p0 = scmp.ne.s32.totalorder %s48_s19, %s4633_s20  ;;  %p4639_p2 = scmp.lt.s32.totalorder %s4633_s20, %s4633_s20 }
   0xc   :  { %p4640_p3 = por %p4639_p2, %p4638_p1 }
   0xe   :  { %p4641_p4 = pnand %p4640_p3, %p4634_p0 }
  0x10   :  { %4644 = shalt.err (!%p4641_p4)
}
  0x11   :  { %50 = dma.hbm_to_vmem [thread:$0]  %s5753_s1, 128, %s48_s19, [#allocation7]  }
  0x12   :  { %s4850_s23 = smov [#allocation9]   ;;  %s4851_s25 = smov [#allocation12]  }
  0x13   :  { %s70_s24 = sshll.u32 %s4850_s23, 4  ;;  %s92_s26 = sshll.u32 %s4851_s25, 4  ;;  %s71_s24 = int_to_ptr.vmem [resolvable:$true] %s70_s24  ;;  %s93_s26 = int_to_ptr.vmem [resolvable:$true] %s92_s26 }
  0x14   :  { %s4653_s27 = scalar_lea.vmem %s71_s24, 128  ;;  %p4658_p6 = scmp.lt.s32.totalorder %s71_s24, %s71_s24 }
  0x15   :  { %p4654_p5 = scmp.ne.s32.totalorder %s71_s24, %s4653_s27  ;;  %p4659_p7 = scmp.lt.s32.totalorder %s4653_s27, %s4653_s27 }
  0x17   :  { %p4660_p8 = por %p4659_p7, %p4658_p6 }
  0x19   :  { %p4661_p9 = pnand %p4660_p8, %p4654_p5 }
  0x1b   :  { %4664 = shalt.err (!%p4661_p9)
}
  0x1c   :  { %s4852_s28 = smov 64   ;;  %s4853_s29 = smov 4  }
  0x1d   :  { %76 = dma.hbm_to_vmem [thread:$0]  %s5757_s5, 128, %s71_s24, [#allocation10], %s4852_s28, %s4852_s28, %s4853_s29  }
  0x1e   :  { %s4673_s1 = scalar_lea.vmem %s93_s26, 3072  ;;  %p4678_p11 = scmp.lt.s32.totalorder %s93_s26, %s93_s26 }
  0x1f   :  { %p4674_p10 = scmp.ne.s32.totalorder %s93_s26, %s4673_s1  ;;  %p4679_p12 = scmp.lt.s32.totalorder %s4673_s1, %s4673_s1 }
  0x21   :  { %p4680_p13 = por %p4679_p12, %p4678_p11 }
  0x23   :  { %p4681_p0 = pnand %p4680_p13, %p4674_p10 }
  0x25   :  { %4684 = shalt.err (!%p4681_p0)
}
  0x26   :  { %s4854_s17 = smov 192   ;;  %s4855_s18 = smov 12  }
  0x27   :  { %98 = dma.hbm_to_vmem [thread:$0]  %s5759_s7, 3072, %s93_s26, [#allocation13], %s4854_s17, %s4854_s17, %s4855_s18  }
  0x28   :  { %s4856_s21 = smov [#allocation2]   ;;  %s4857_s5 = smov [#allocation8]  }
  0x29   :  { %s34_s22 = sshll.u32 %s4856_s21, 4  ;;  %s57_s23 = sshll.u32 %s4857_s5, 4  ;;  %s35_s22 = int_to_ptr.vmem [resolvable:$true] %s34_s22  ;;  %s58_s23 = int_to_ptr.vmem [resolvable:$true] %s57_s23 }
  0x2a   :  { %s4693_s24 = scalar_lea.vmem %s35_s22, 320  ;;  %p4698_p2 = scmp.lt.s32.totalorder %s35_s22, %s35_s22 }
  0x2b   :  { %p4694_p1 = scmp.ne.s32.totalorder %s35_s22, %s4693_s24  ;;  %p4699_p3 = scmp.lt.s32.totalorder %s4693_s24, %s4693_s24 }
  0x2d   :  { %p4700_p4 = por %p4699_p3, %p4698_p2 }
  0x2f   :  { %p4701_p5 = pnand %p4700_p4, %p4694_p1 }
  0x31   :  { %4704 = shalt.err (!%p4701_p5)
}
  0x32   :  { %40 = dma.hbm_to_vmem [thread:$0]  %s5752_s0, 320, %s35_s22, [#allocation3], %s4852_s28, %s4852_s28, %s4853_s29  }
  0x33   :  { %s4713_s30 = scalar_lea.vmem %s58_s23, 128  ;;  %p4718_p7 = scmp.lt.s32.totalorder %s58_s23, %s58_s23 }
  0x34   :  { %p4714_p6 = scmp.ne.s32.totalorder %s58_s23, %s4713_s30  ;;  %p4719_p8 = scmp.lt.s32.totalorder %s4713_s30, %s4713_s30 }
  0x36   :  { %p4720_p9 = por %p4719_p8, %p4718_p7 }
  0x38   :  { %p4721_p10 = pnand %p4720_p9, %p4714_p6 }
  0x3a   :  { %4724 = shalt.err (!%p4721_p10)
}
  0x3b   :  { %60 = dma.hbm_to_vmem [thread:$0]  %s5754_s2, 128, %s58_s23, [#allocation7]  }
  0x3c   :  { %s4858_s16 = smov [#allocation11]   ;;  %s4859_s19 = smov [#allocation14]  }
  0x3d   :  { %s83_s1 = sshll.u32 %s4858_s16, 4  ;;  %s104_s20 = sshll.u32 %s4859_s19, 4  ;;  %s84_s1 = int_to_ptr.vmem [resolvable:$true] %s83_s1  ;;  %s105_s20 = int_to_ptr.vmem [resolvable:$true] %s104_s20 }
  0x3e   :  { %s4733_s21 = scalar_lea.vmem %s84_s1, 16  ;;  %s4737_s0 = scalar_lea.vmem %s84_s1, 32 }
  0x3f   :  { %p4734_p11 = scmp.ne.s32.totalorder %s84_s1, %s4733_s21  ;;  %p4738_p12 = scmp.lt.s32.totalorder %s84_s1, %s84_s1 }
  0x40   :  { %p4739_p13 = scmp.lt.s32.totalorder %s4737_s0, %s4733_s21 }
  0x42   :  { %p4740_p0 = por %p4739_p13, %p4738_p12 }
  0x44   :  { %p4741_p1 = pnand %p4740_p0, %p4734_p11 }
  0x46   :  { %4744 = shalt.err (!%p4741_p1)
}
  0x47   :  { %86 = dma.hbm_to_vmem [thread:$0]  %s5758_s6, 16, %s84_s1, [#allocation10]  }
  0x48   :  { %s4753_s22 = scalar_lea.vmem %s105_s20, 3072  ;;  %p4758_p3 = scmp.lt.s32.totalorder %s105_s20, %s105_s20 }
  0x49   :  { %p4754_p2 = scmp.ne.s32.totalorder %s105_s20, %s4753_s22  ;;  %p4759_p4 = scmp.lt.s32.totalorder %s4753_s22, %s4753_s22 }
  0x4b   :  { %p4760_p5 = por %p4759_p4, %p4758_p3 }
  0x4d   :  { %p4761_p6 = pnand %p4760_p5, %p4754_p2 }
  0x4f   :  { %4764 = shalt.err (!%p4761_p6)
}
  0x50   :  { %110 = dma.hbm_to_vmem [thread:$0]  %s5760_s8, 3072, %s105_s20, [#allocation13], %s4854_s17, %s4854_s17, %s4855_s18  }
  0x51   :  { %s4860_s23 = smov [#allocation15]  }
  0x52   :  { %s119_s24 = sshll.u32 %s4860_s23, 4  ;;  %s120_s24 = int_to_ptr.vmem [resolvable:$true] %s119_s24 }
  0x53   :  { %s4773_s25 = scalar_lea.vmem %s120_s24, 48  ;;  %s4777_s6 = scalar_lea.vmem %s120_s24, 64 }
  0x54   :  { %p4774_p7 = scmp.ne.s32.totalorder %s120_s24, %s4773_s25  ;;  %p4778_p8 = scmp.lt.s32.totalorder %s120_s24, %s120_s24 }
  0x55   :  { %p4779_p9 = scmp.lt.s32.totalorder %s4777_s6, %s4773_s25 }
  0x57   :  { %p4780_p10 = por %p4779_p9, %p4778_p8 }
  0x59   :  { %p4781_p11 = pnand %p4780_p10, %p4774_p7 }
  0x5b   :  { %4784 = shalt.err (!%p4781_p11)
}
  0x5c   :  { %122 = dma.hbm_to_vmem [thread:$0]  %s5762_s10, 48, %s120_s24, [#allocation16]  }
  0x5d   :  { %4833 = dma.done.wait [#allocation3], 320  }
  0x5e   :  { %4834 = vsyncadd [#allocation3], 4294966976 }
  0x5f   :  { %4835 = dma.done.wait [#allocation7], 256  }
  0x60   :  { %4836 = vsyncadd [#allocation7], 4294967040 }
  0x61   :  { %4837 = dma.done.wait [#allocation10], 144  }
  0x62   :  { %4838 = vsyncadd [#allocation10], 4294967152 }
  0x63   :  { %4839 = dma.done.wait [#allocation13], 6144  }
  0x64   :  { %4840 = vsyncadd [#allocation13], 4294961152 }
  0x65   :  { %4841 = dma.done.wait [#allocation16], 48  }
  0x66   :  { %4842 = vsyncadd [#allocation16], 4294967248  ;;  %v4861_v0 = vmov 0.0   ;;  %vm4862_vm0 = vmmov 0   ;;  %v4329_v1 = vld [vmem:[%s5755_s3 + $0x18] sm:$0xff]   ;;  %v4330_v2 = vld [vmem:[%s5755_s3 + $0x10] sm:$0xff]   ;;  %v307_v19 = vlaneseq }
  0x67   :  { %3987 = vmatprep.subr.bf16.mxu0 %v4861_v0  ;;  %3995 = vmatprep.mubr.msk.bf16.mxu0 %vm4862_vm0, %v4861_v0  ;;  %v4331_v3 = vld [vmem:[%s5755_s3 + $0x8] sm:$0xff]   ;;  %v4332_v4 = vld [vmem:[%s5755_s3] sm:$0xff]   ;;  %v152_v5 = vld [vmem:[#allocation6] sm:$0xff]  ;;  %vm193_vm1 = vcmask 523264   ;;  %s4863_s3 = smov 112   ;;  %s4864_s21 = smov 16  }
  0x68   :  { %3988 = vmatpush3.bf16.msra.mxu0 %v4329_v1  ;;  %v153_v6 = vpack.c.bf16 %v152_v5, %v152_v5  ;;  %v4333_v7 = vld [vmem:[#allocation9] sm:$0xff]   ;;  %v3544_v8 = vld [vmem:[%s5756_s4] ss:$0 sm:$0xff]  ;;  %v5013_v24 = vshrl.u32 %v307_v19, 7  ;;  %vm263_vm3 = vcmask 130048   ;;  %v4865_v37 = vmov 0  }
  0x69   :  { %3989 = vmatprep.subr.bf16.mxu0 %v4861_v0  ;;  %v5007_v20 = vld [vmem:[#allocation12 + $0xac] ss:$12 sps:$4 sm:$0xff]   ;;  %v5009_v21 = vld [vmem:[#allocation12 + $0xa8] ss:$12 sps:$4 sm:$0xff]   ;;  %v5017_v26 = vld [vmem:[#allocation12 + $0x90] ss:$12 sps:$4 sm:$0xff]   ;;  %552 = vmatprep.mubr.bf16.mxu1 %v4865_v37 }
  0x6a   :  { %v5011_v22 = vld [vmem:[#allocation12 + $0x94] ss:$12 sps:$4 sm:$0xff]   ;;  %520 = vmatprep.subr.bf16.mxu1 %v5007_v20  ;;  %v5020_v28 = vld [vmem:[#allocation12 + $0x7c] ss:$12 sps:$4 sm:$0xff]   ;;  %vm309_vm2 = vcmp.lt.s32.totalorder %v5013_v24, 2 }
  0x6b   :  { %v240_v23 = vld [vmem:[#allocation8] sm:$0xff]  ;;  %521 = vmatpush1.bf16.msra.mxu1 %v5009_v21  ;;  %v5024_v33 = vld [vmem:[#allocation12 + $0x78] ss:$12 sps:$4 sm:$0xff]   ;;  %v3553_v39 = vsel %vm309_vm2, 1.0, %v4861_v0  ;;  %v5054_v50 = vld [vmem:[#allocation12 + $0x1c] ss:$12 sps:$4 sm:$0xff]  }
  0x6c   :  { %3990 = vmatpush3.bf16.msra.mxu0 %v4330_v2  ;;  %522 = vmatprep.subr.bf16.mxu1 %v5011_v22  ;;  %v4340_v32 = vld [vmem:[#allocation12 + $0xb0] ss:$12 sps:$4 sm:$0xff]   ;;  %v4344_v41 = vld [vmem:[#allocation12 + $0x98] ss:$12 sps:$4 sm:$0xff]   ;;  %v5033_v42 = vld [vmem:[#allocation12 + $0x60] ss:$12 sps:$4 sm:$0xff]  }
  0x6d   :  { %3991 = vmatprep.subr.bf16.mxu0 %v4861_v0  ;;  %v5027_v36 = vld [vmem:[#allocation12 + $0x64] ss:$12 sps:$4 sm:$0xff]   ;;  %v5037_v44 = vld [vmem:[#allocation12 + $0x4c] ss:$12 sps:$4 sm:$0xff]   ;;  %v5043_v46 = vld [vmem:[#allocation12 + $0x48] ss:$12 sps:$4 sm:$0xff]  }
  0x6e   :  { %v4348_v45 = vld [vmem:[#allocation12 + $0x80] ss:$12 sps:$4 sm:$0xff]   ;;  %v4352_v48 = vld [vmem:[#allocation12 + $0x68] ss:$12 sps:$4 sm:$0xff]   ;;  %v5050_v49 = vld [vmem:[#allocation12 + $0x30] ss:$12 sps:$4 sm:$0xff]  }
  0x6f   :  { %523 = vmatpush1.bf16.msra.mxu1 %v5017_v26  ;;  %v5047_v47 = vld [vmem:[#allocation12 + $0x34] ss:$12 sps:$4 sm:$0xff]   ;;  %v4356_v51 = vld [vmem:[#allocation12 + $0x50] ss:$12 sps:$4 sm:$0xff]   ;;  %v5057_v52 = vld [vmem:[#allocation12 + $0x18] ss:$12 sps:$4 sm:$0xff]  }
  0x70   :  { %3992 = vmatpush3.bf16.msra.mxu0 %v4331_v3  ;;  %524 = vmatprep.subr.bf16.mxu1 %v5020_v28  ;;  %v5061_v53 = vld [vmem:[#allocation12 + $0x4] ss:$12 sps:$4 sm:$0xff]   ;;  %v5064_v55 = vld [vmem:[#allocation12] ss:$12 sps:$4 sm:$0xff]   ;;  %v5071_v59 = vld [vmem:[#allocation14 + $0xa8] ss:$12 sps:$4 sm:$0xff]  }
  0x71   :  { %3993 = vmatprep.subr.bf16.mxu0 %v4861_v0  ;;  %v4360_v54 = vld [vmem:[#allocation12 + $0x38] ss:$12 sps:$4 sm:$0xff]   ;;  %v4364_v57 = vld [vmem:[#allocation12 + $0x20] ss:$12 sps:$4 sm:$0xff]   ;;  %v343_v58 = vld [vmem:[#allocation2] sm:$0xf] }
  0x72   :  { %v5068_v56 = vld [vmem:[#allocation14 + $0xac] ss:$12 sps:$4 sm:$0xff]   ;;  %v5075_v60 = vld [vmem:[#allocation14 + $0x94] ss:$12 sps:$4 sm:$0xff]   ;;  %v5078_v62 = vld [vmem:[#allocation14 + $0x90] ss:$12 sps:$4 sm:$0xff]  }
  0x73   :  { %525 = vmatpush1.bf16.msra.mxu1 %v5024_v33  ;;  %v4365_v61 = vld [vmem:[#allocation12 + $0x8] ss:$12 sps:$4 sm:$0xff]   ;;  %v4369_v1 = vld [vmem:[#allocation14 + $0xb0] ss:$12 sps:$4 sm:$0xff]   ;;  %v5086_v2 = vld [vmem:[#allocation14 + $0x78] ss:$12 sps:$4 sm:$0xff]  }
  0x74   :  { %3994 = vmatpush3.bf16.msra.mxu0 %v4332_v4  ;;  %526 = vmatprep.subr.bf16.mxu1 %v5027_v36  ;;  %v5082_v63 = vld [vmem:[#allocation14 + $0x7c] ss:$12 sps:$4 sm:$0xff]   ;;  %v5090_v3 = vld [vmem:[#allocation14 + $0x64] ss:$12 sps:$4 sm:$0xff]   ;;  %v5093_v5 = vld [vmem:[#allocation14 + $0x60] ss:$12 sps:$4 sm:$0xff]  }
  0x75   :  { %3999 = vmatprep.subr.bf16.mxu0 %v4861_v0  ;;  %v4373_v4 = vld [vmem:[#allocation14 + $0x98] ss:$12 sps:$4 sm:$0xff]   ;;  %v4397_v19 = vld [vmem:[#allocation14 + $0x8] ss:$12 sps:$4 sm:$0xff]  }
  0x77   :  { %3996 = vmatmul.mubr.msk.bf16.vlgmr.msra.gmra.mxu0 %vm193_vm1, %v153_v6  ;;  %527 = vmatpush1.bf16.msra.mxu1 %v5033_v42  ;;  %v5097_v6 = vld [vmem:[#allocation14 + $0x4c] ss:$12 sps:$4 sm:$0xff]  }
  0x78   :  { %4001 = vmatprep.mubr.msk.bf16.mxu0 %vm4862_vm0, %v4861_v0  ;;  %4000 = vmatpush3.bf16.msra.mxu0 %v4333_v7  ;;  %v4377_v7 = vld [vmem:[#allocation14 + $0x80] ss:$12 sps:$4 sm:$0xff]  }
  0x79   :  { %4005 = vmatprep.subr.bf16.mxu0 %v4861_v0  ;;  %528 = vmatprep.subr.bf16.mxu1 %v5037_v44 }
  0x7b   :  { %529 = vmatpush1.bf16.msra.mxu1 %v5043_v46 }
  0x7c   :  { %530 = vmatprep.subr.bf16.mxu1 %v5047_v47 }
  0x7f   :  { %531 = vmatpush1.bf16.msra.mxu1 %v5050_v49 }
  0x80   :  { %532 = vmatprep.subr.bf16.mxu1 %v5054_v50 }
  0x83   :  { %533 = vmatpush1.bf16.msra.mxu1 %v5057_v52 }
  0x84   :  { %534 = vmatprep.subr.bf16.mxu1 %v5061_v53 }
  0x87   :  { %535 = vmatpush1.bf16.msra.mxu1 %v5064_v55 }
  0x88   :  { %778 = vmatprep.subr.bf16.mxu1 %v5068_v56 }
  0x8a   :  { %553 = vmatmul.mubr.bf16.vlgmr.msra.gmra.mxu1 %v343_v58 }
  0x8b   :  { %779 = vmatpush1.bf16.msra.mxu1 %v5071_v59  ;;  %810 = vmatprep.mubr.bf16.mxu1 %v4865_v37 }
  0x8c   :  { %780 = vmatprep.subr.bf16.mxu1 %v5075_v60 }
  0x8f   :  { %781 = vmatpush1.bf16.msra.mxu1 %v5078_v62 }
  0x90   :  { %782 = vmatprep.subr.bf16.mxu1 %v5082_v63 }
  0x93   :  { %783 = vmatpush1.bf16.msra.mxu1 %v5086_v2 }
  0x94   :  { %784 = vmatprep.subr.bf16.mxu1 %v5090_v3 }
  0x97   :  { %785 = vmatpush1.bf16.msra.mxu1 %v5093_v5 }
  0x98   :  { %786 = vmatprep.subr.bf16.mxu1 %v5097_v6 }
 0x137   :  { %v231_v9 = vpop.f32.mrf.mxu0 }
 0x138   :  { %v232_v10 = vadd.f32 %v3544_v8, %v231_v9  ;;  %v5102_v8 = vld [vmem:[#allocation14 + $0x48] ss:$12 sps:$4 sm:$0xff]  }
 0x139   :  { %v3997_v11 = vpop.f32.mrf.mxu0  ;;  %v5106_v9 = vld [vmem:[#allocation14 + $0x34] ss:$12 sps:$4 sm:$0xff]   ;;  %787 = vmatpush1.bf16.msra.mxu1 %v5102_v8 }
 0x13a   :  { %v237_v12 = vmul.f32 0.5, %v232_v10  ;;  %v313_v17 = vmul.f32 %v232_v10, %v232_v10  ;;  %v319_v18 = vmul.f32 1.442695, %v232_v10  ;;  %v312_v30 = vadd.f32 1.0, %v232_v10  ;;  %v5109_v11 = vld [vmem:[#allocation14 + $0x30] ss:$12 sps:$4 sm:$0xff]   ;;  %788 = vmatprep.subr.bf16.mxu1 %v5106_v9 }
 0x13b   :  { %v234_v13 = vpop.f32.mrf.mxu0 }
 0x13c   :  { %v238_v14 = vmul.f32 1.442695, %v237_v12  ;;  %v5113_v12 = vld [vmem:[#allocation14 + $0x1c] ss:$12 sps:$4 sm:$0xff]  }
 0x13d   :  { %v3998_v15 = vpop.f32.mrf.mxu0  ;;  %v4385_v13 = vld [vmem:[#allocation14 + $0x50] ss:$12 sps:$4 sm:$0xff]   ;;  %789 = vmatpush1.bf16.msra.mxu1 %v5109_v11 }
 0x13e   :  { %4550 = vpow2.f32 %v238_v14  ;;  %v5116_v14 = vld [vmem:[#allocation14 + $0x18] ss:$12 sps:$4 sm:$0xff]   ;;  %790 = vmatprep.subr.bf16.mxu1 %v5113_v12 }
 0x13f   :  { %4552 = vpow2.f32 %v319_v18  ;;  %v4389_v15 = vld [vmem:[#allocation14 + $0x38] ss:$12 sps:$4 sm:$0xff]   ;;  %v5126_v18 = vld [vmem:[#allocation14] ss:$12 sps:$4 sm:$0xff]  }
 0x141   :  { %791 = vmatpush1.bf16.msra.mxu1 %v5116_v14 }
 0x14b   :  { %v4551_v16 = vpop.eup %4550 }
 0x14c   :  { %242 = vrot.lane.b32.xlu0 %v4551_v16, %s4863_s3  ;;  %v4553_v38 = vpop.eup %4552  ;;  %v4393_v16 = vld [vmem:[#allocation14 + $0x20] ss:$12 sps:$4 sm:$0xff]  }
 0x150   :  { %315 = vrot.lane.b32.xlu0 %v313_v17, %s4864_s21  ;;  %v5124_v17 = vld [vmem:[#allocation14 + $0x4] ss:$12 sps:$4 sm:$0xff]  }
 0x151   :  { %792 = vmatprep.subr.bf16.mxu1 %v5124_v17 }
 0x152   :  { %793 = vmatpush1.bf16.msra.mxu1 %v5126_v18 }
 0x153   :  { %4045 = vmatprep.subr.bf16.mxu1 %v4861_v0 }
 0x1be   :  { %v243_v25 = vpop.permute.xlu0 %242 }
 0x1bf   :  { %v245_v27 = vmul.f32 %v243_v25, %v240_v23  ;;  %v3550_v23 = vld [vmem:[#allocation11] ss:$0 sm:$0xff] }
 0x1c1   :  { %v246_v29 = vadd.f32 %v245_v27, %v232_v10  ;;  %v4381_v10 = vld [vmem:[#allocation14 + $0x68] ss:$12 sps:$4 sm:$0xff]  }
 0x1c2   :  { %v316_v31 = vpop.permute.xlu0 %315 }
 0x1c3   :  { %v247_v34 = vpack.c.bf16 %v246_v29, %v246_v29  ;;  %v318_v35 = vsub.f32 %v312_v30, %v316_v31 }
 0x1c5   :  { %v321_v40 = vsub.f32 %v318_v35, %v4553_v38  ;;  %4002 = vmatmul.mubr.msk.bf16.vlgmr.msra.gmra.mxu0 %vm263_vm3, %v247_v34  ;;  %v5149_v34 = vpop.f32.mrf.mxu1 }
 0x1c6   :  { %4006 = vmatpush3.bf16.msra.mxu0 %v4340_v32  ;;  %4021 = vmatprep.mubr.msk.bf16.mxu0 %vm4862_vm0, %v4861_v0 }
 0x1c7   :  { %v322_v43 = vmul.f32 %v3553_v39, %v321_v40  ;;  %4007 = vmatprep.subr.bf16.mxu0 %v4861_v0  ;;  %v5151_v35 = vpop.f32.mrf.mxu1 }
 0x1c9   :  { %324 = vrot.lane.b32.xlu1 %v322_v43, %s4863_s3  ;;  %v558_v38 = vpop.f32.mrf.mxu1 }
 0x1ca   :  { %4008 = vmatpush3.bf16.msra.mxu0 %v4344_v41 }
 0x1cb   :  { %4009 = vmatprep.subr.bf16.mxu0 %v4861_v0  ;;  %v559_v39 = vpop.f32.mrf.mxu1 }
 0x1ce   :  { %4010 = vmatpush3.bf16.msra.mxu0 %v4348_v45 }
 0x1cf   :  { %4011 = vmatprep.subr.bf16.mxu0 %v4861_v0 }
 0x1d2   :  { %4012 = vmatpush3.bf16.msra.mxu0 %v4352_v48  ;;  %v4398_v48 = vld [vmem:[%s5763_s11 + $0x38] sm:$0xff]  }
 0x1d3   :  { %4013 = vmatprep.subr.bf16.mxu0 %v4861_v0 }
 0x1d6   :  { %4014 = vmatpush3.bf16.msra.mxu0 %v4356_v51  ;;  %v5164_v51 = vld [vmem:[#allocation2 + $0x4] sm:$0xf] }
 0x1d7   :  { %4015 = vmatprep.subr.bf16.mxu0 %v4861_v0 }
 0x1da   :  { %4016 = vmatpush3.bf16.msra.mxu0 %v4360_v54  ;;  %v4399_v54 = vld [vmem:[%s5763_s11 + $0x30] sm:$0xff]  }
 0x1db   :  { %4017 = vmatprep.subr.bf16.mxu0 %v4861_v0 }
 0x1de   :  { %4018 = vmatpush3.bf16.msra.mxu0 %v4364_v57  ;;  %v4400_v57 = vld [vmem:[%s5763_s11 + $0x28] sm:$0xff]  }
 0x1df   :  { %4019 = vmatprep.subr.bf16.mxu0 %v4861_v0 }
 0x1e2   :  { %4020 = vmatpush3.bf16.msra.mxu0 %v4365_v61  ;;  %v4402_v61 = vld [vmem:[%s5763_s11 + $0x18] sm:$0xff]  }
 0x1e3   :  { %4025 = vmatprep.subr.bf16.mxu0 %v4861_v0 }
 0x1e5   :  { %4022 = vmatmul.mubr.bf16.vlgmr.msra.gmra.mxu0 %v343_v58  ;;  %v4401_v58 = vld [vmem:[%s5763_s11 + $0x20] sm:$0xff]  }
 0x1e6   :  { %4026 = vmatpush3.bf16.msra.mxu0 %v4369_v1  ;;  %4041 = vmatprep.mubr.msk.bf16.mxu0 %vm4862_vm0, %v4861_v0  ;;  %v4403_v1 = vld [vmem:[%s5763_s11 + $0x10] sm:$0xff]  }
 0x1e7   :  { %4027 = vmatprep.subr.bf16.mxu0 %v4861_v0 }
 0x1ea   :  { %4028 = vmatpush3.bf16.msra.mxu0 %v4373_v4  ;;  %v4404_v4 = vld [vmem:[%s5763_s11 + $0x8] sm:$0xff]  }
 0x1eb   :  { %4029 = vmatprep.subr.bf16.mxu0 %v4861_v0 }
 0x1ee   :  { %4030 = vmatpush3.bf16.msra.mxu0 %v4377_v7  ;;  %v4405_v7 = vld [vmem:[%s5763_s11] sm:$0xff]  }
 0x1ef   :  { %4031 = vmatprep.subr.bf16.mxu0 %v4861_v0 }
 0x1f2   :  { %4032 = vmatpush3.bf16.msra.mxu0 %v4381_v10  ;;  %v379_v10 = vsub.s32 0, %v5013_v24 }
 0x1f3   :  { %4033 = vmatprep.subr.bf16.mxu0 %v4861_v0 }
 0x1f6   :  { %4034 = vmatpush3.bf16.msra.mxu0 %v4385_v13  ;;  %v340_v13 = vld [vmem:[%s5761_s9] sm:$0x7] }
 0x1f7   :  { %4035 = vmatprep.subr.bf16.mxu0 %v4861_v0 }
 0x1fa   :  { %4036 = vmatpush3.bf16.msra.mxu0 %v4389_v15  ;;  %v341_v15 = vld [vmem:[#allocation15] sm:$0x7] }
 0x1fb   :  { %4037 = vmatprep.subr.bf16.mxu0 %v4861_v0 }
 0x1fe   :  { %4038 = vmatpush3.bf16.msra.mxu0 %v4393_v16  ;;  %v5217_v16 = vrot.slane %v340_v13, %v379_v10 }
 0x1ff   :  { %4039 = vmatprep.subr.bf16.mxu0 %v4861_v0 }
 0x202   :  { %4040 = vmatpush3.bf16.msra.mxu0 %v4397_v19  ;;  %v5219_v19 = vrot.slane %v341_v15, %v379_v10 }
 0x203   :  { %1165 = vmatprep.subr.bf16.mxu0 %v5007_v20 }
 0x285   :  { %v301_v25 = vpop.f32.mrf.mxu0 }
 0x286   :  { %v5132_v27 = vadd.f32 %v3550_v23, %v301_v25  ;;  %v383_v23 = vsub.s32 1, %v5013_v24 }
 0x287   :  { %v4003_v29 = vpop.f32.mrf.mxu0 }
 0x288   :  { %v601_v30 = vpack.c.bf16 %v5132_v27, %v5132_v27 }
 0x289   :  { %v304_v31 = vpop.f32.mrf.mxu0 }
 0x28a   :  { %811 = vmatmul.mubr.bf16.vlgmr.msra.gmra.mxu1 %v601_v30  ;;  %4042 = vmatmul.mubr.bf16.vlgmr.msra.gmra.mxu0 %v601_v30  ;;  %v555_v30 = vadd.f32 %v5149_v34, %v5217_v16 }
 0x28b   :  { %v4004_v32 = vpop.f32.mrf.mxu0  ;;  %1166 = vmatpush1.bf16.msra.mxu0 %v5009_v21  ;;  %1197 = vmatprep.mubr.bf16.mxu0 %v4865_v37 }
 0x28c   :  { %1167 = vmatprep.subr.bf16.mxu0 %v5011_v22  ;;  %4061 = vmatprep.mubr.msk.bf16.mxu1 %vm4862_vm0, %v4861_v0  ;;  %v5225_v32 = vrot.slane %v341_v15, %v383_v23 }
 0x28d   :  { %4046 = vmatpush3.bf16.msra.mxu1 %v4398_v48 }
 0x28e   :  { %4047 = vmatprep.subr.bf16.mxu1 %v4861_v0 }
 0x28f   :  { %1168 = vmatpush1.bf16.msra.mxu0 %v5017_v26 }
 0x290   :  { %1169 = vmatprep.subr.bf16.mxu0 %v5020_v28 }
 0x291   :  { %4048 = vmatpush3.bf16.msra.mxu1 %v4399_v54 }
 0x292   :  { %4049 = vmatprep.subr.bf16.mxu1 %v4861_v0 }
 0x293   :  { %1170 = vmatpush1.bf16.msra.mxu0 %v5024_v33 }
 0x294   :  { %1171 = vmatprep.subr.bf16.mxu0 %v5027_v36 }
 0x295   :  { %4050 = vmatpush3.bf16.msra.mxu1 %v4400_v57 }
 0x296   :  { %4051 = vmatprep.subr.bf16.mxu1 %v4861_v0 }
 0x297   :  { %1172 = vmatpush1.bf16.msra.mxu0 %v5033_v42 }
 0x298   :  { %1173 = vmatprep.subr.bf16.mxu0 %v5037_v44 }
 0x299   :  { %4052 = vmatpush3.bf16.msra.mxu1 %v4401_v58 }
 0x29a   :  { %4053 = vmatprep.subr.bf16.mxu1 %v4861_v0 }
 0x29b   :  { %1174 = vmatpush1.bf16.msra.mxu0 %v5043_v46 }
 0x29c   :  { %1175 = vmatprep.subr.bf16.mxu0 %v5047_v47 }
 0x29d   :  { %4054 = vmatpush3.bf16.msra.mxu1 %v4402_v61 }
 0x29e   :  { %4055 = vmatprep.subr.bf16.mxu1 %v4861_v0 }
 0x29f   :  { %1176 = vmatpush1.bf16.msra.mxu0 %v5050_v49 }
 0x2a0   :  { %1177 = vmatprep.subr.bf16.mxu0 %v5054_v50 }
 0x2a1   :  { %4056 = vmatpush3.bf16.msra.mxu1 %v4403_v1 }
 0x2a2   :  { %4057 = vmatprep.subr.bf16.mxu1 %v4861_v0 }
 0x2a3   :  { %1178 = vmatpush1.bf16.msra.mxu0 %v5057_v52 }
 0x2a4   :  { %1179 = vmatprep.subr.bf16.mxu0 %v5061_v53 }
 0x2a5   :  { %v5157_v40 = vpop.f32.mrf.mxu0  ;;  %4058 = vmatpush3.bf16.msra.mxu1 %v4404_v4 }
 0x2a6   :  { %4059 = vmatprep.subr.bf16.mxu1 %v4861_v0 }
 0x2a7   :  { %v4023_v41 = vpop.f32.mrf.mxu0  ;;  %1180 = vmatpush1.bf16.msra.mxu0 %v5064_v55 }
 0x2a8   :  { %1406 = vmatprep.subr.bf16.mxu0 %v5068_v56  ;;  %v5227_v41 = vrot.slane %v340_v13, %v383_v23  ;;  %v387_v23 = vsub.s32 2, %v5013_v24 }
 0x2a9   :  { %v598_v43 = vpop.f32.mrf.mxu0  ;;  %4060 = vmatpush3.bf16.msra.mxu1 %v4405_v7 }
 0x2aa   :  { %1198 = vmatmul.mubr.bf16.vlgmr.msra.gmra.mxu0 %v5164_v51  ;;  %4065 = vmatprep.subr.bf16.mxu1 %v4861_v0  ;;  %v557_v1 = vadd.f32 %v5151_v35, %v5227_v41 }
 0x2ab   :  { %v4024_v45 = vpop.f32.mrf.mxu0  ;;  %1407 = vmatpush1.bf16.msra.mxu0 %v5071_v59  ;;  %1438 = vmatprep.mubr.bf16.mxu0 %v4865_v37 }
 0x2ac   :  { %1408 = vmatprep.subr.bf16.mxu0 %v5075_v60 }
 0x2af   :  { %1409 = vmatpush1.bf16.msra.mxu0 %v5078_v62 }
 0x2b0   :  { %1410 = vmatprep.subr.bf16.mxu0 %v5082_v63 }
 0x2b3   :  { %1411 = vmatpush1.bf16.msra.mxu0 %v5086_v2 }
 0x2b4   :  { %1412 = vmatprep.subr.bf16.mxu0 %v5090_v3 }
 0x2b7   :  { %1413 = vmatpush1.bf16.msra.mxu0 %v5093_v5 }
 0x2b8   :  { %1414 = vmatprep.subr.bf16.mxu0 %v5097_v6 }
 0x2bb   :  { %1415 = vmatpush1.bf16.msra.mxu0 %v5102_v8 }
 0x2bc   :  { %1416 = vmatprep.subr.bf16.mxu0 %v5106_v9 }
 0x2bf   :  { %1417 = vmatpush1.bf16.msra.mxu0 %v5109_v11 }
 0x2c0   :  { %1418 = vmatprep.subr.bf16.mxu0 %v5113_v12 }
 0x2c3   :  { %1419 = vmatpush1.bf16.msra.mxu0 %v5116_v14 }
 0x2c4   :  { %1420 = vmatprep.subr.bf16.mxu0 %v5124_v17 }
 0x2c7   :  { %1421 = vmatpush1.bf16.msra.mxu0 %v5126_v18 }
 0x2c8   :  { %4105 = vmatprep.subr.bf16.mxu0 %v4861_v0 }
 0x34a   :  { %v812_v25 = vpop.f32.mrf.mxu1  ;;  %v853_v29 = vpop.f32.mrf.mxu0 }
 0x34b   :  { %v813_v31 = vadd.f32 %v812_v25, %v5219_v19 }
 0x34c   :  { %v814_v38 = vpop.f32.mrf.mxu1  ;;  %v4043_v39 = vpop.f32.mrf.mxu0 }
 0x34d   :  { %v859_v43 = vadd.f32 %v813_v31, %v555_v30  ;;  %v815_v57 = vadd.f32 %v814_v38, %v5225_v32  ;;  %v5233_v30 = vrot.slane %v341_v15, %v387_v23  ;;  %v5235_v31 = vrot.slane %v340_v13, %v387_v23  ;;  %v4406_v13 = vld [vmem:[#allocation12 + $0xb0] ss:$12 sps:$4 sm:$0xff]  }
 0x34e   :  { %v816_v45 = vpop.f32.mrf.mxu1  ;;  %v856_v48 = vpop.f32.mrf.mxu0  ;;  %v4414_v23 = vld [vmem:[#allocation14 + $0xb0] ss:$12 sps:$4 sm:$0xff]  }
 0x34f   :  { %v3602_v54 = vmul.f32 -1.442695, %v859_v43  ;;  %v866_v34 = vadd.f32 %v815_v57, %v557_v1  ;;  %v854_v39 = vadd.f32 %v853_v29, %v5233_v30  ;;  %v596_v35 = vadd.f32 %v5157_v40, %v5235_v31  ;;  %v4407_v40 = vld [vmem:[#allocation12 + $0x98] ss:$12 sps:$4 sm:$0xff]   ;;  %v4409_v1 = vld [vmem:[#allocation12 + $0x68] ss:$12 sps:$4 sm:$0xff]  }
 0x350   :  { %v817_v58 = vpop.f32.mrf.mxu1  ;;  %v4044_v61 = vpop.f32.mrf.mxu0 }
 0x351   :  { %4554 = vpow2.f32 %v3602_v54  ;;  %v3603_v4 = vmul.f32 -1.442695, %v866_v34  ;;  %v4410_v34 = vld [vmem:[#allocation12 + $0x50] ss:$12 sps:$4 sm:$0xff]  }
 0x353   :  { %4556 = vpow2.f32 %v3603_v4  ;;  %v4411_v4 = vld [vmem:[#allocation12 + $0x38] ss:$12 sps:$4 sm:$0xff]  }
 0x35e   :  { %v4555_v7 = vpop.eup %4554 }
 0x35f   :  { %v863_v10 = vadd.f32 1.0, %v4555_v7  ;;  %v4412_v7 = vld [vmem:[#allocation12 + $0x20] ss:$12 sps:$4 sm:$0xff]  }
 0x360   :  { %v4557_v25 = vpop.eup %4556 }
 0x361   :  { %4558 = vrcp.f32 %v863_v10  ;;  %v870_v38 = vadd.f32 1.0, %v4557_v25  ;;  %v4413_v10 = vld [vmem:[#allocation12 + $0x8] ss:$12 sps:$4 sm:$0xff]   ;;  %v4415_v25 = vld [vmem:[#allocation14 + $0x98] ss:$12 sps:$4 sm:$0xff]  }
 0x363   :  { %4560 = vrcp.f32 %v870_v38 }
 0x36a   :  { %v5260_v38 = vpop.f32.mrf.mxu0 }
 0x36e   :  { %v4559_v43 = vpop.eup %4558 }
 0x36f   :  { %v873_v45 = vmul.f32 %v4559_v43, %v854_v39  ;;  %v5263_v39 = vpop.f32.mrf.mxu0  ;;  %v4416_v43 = vld [vmem:[#allocation14 + $0x80] ss:$12 sps:$4 sm:$0xff]  }
 0x370   :  { %v4561_v54 = vpop.eup %4560 }
 0x371   :  { %v874_v48 = vadd.f32 %v873_v45, %v596_v35  ;;  %v876_v57 = vsub.f32 1.0, %v4561_v54  ;;  %v878_v15 = vmul.f32 %v4561_v54, %v5132_v27  ;;  %v4408_v27 = vld [vmem:[#allocation12 + $0x80] ss:$12 sps:$4 sm:$0xff]   ;;  %v1203_v35 = vpop.f32.mrf.mxu0  ;;  %v4419_v54 = vld [vmem:[#allocation14 + $0x38] ss:$12 sps:$4 sm:$0xff]  }
 0x373   :  { %4562 = vtanh.f32 %v874_v48  ;;  %v1204_v45 = vpop.f32.mrf.mxu0  ;;  %v4417_v48 = vld [vmem:[#allocation14 + $0x68] ss:$12 sps:$4 sm:$0xff]  }
 0x380   :  { %v4563_v58 = vpop.eup %4562 }
 0x381   :  { %v877_v24 = vmul.f32 %v4563_v58, %v876_v57  ;;  %v4420_v57 = vld [vmem:[#allocation14 + $0x20] ss:$12 sps:$4 sm:$0xff]   ;;  %v4421_v58 = vld [vmem:[#allocation14 + $0x8] ss:$12 sps:$4 sm:$0xff]  }
 0x383   :  { %v5241_v61 = vadd.f32 %v878_v15, %v877_v24 }
 0x385   :  { %v880_v29 = vpack.c.bf16 %v5241_v61, %v5241_v61 }
 0x387   :  { %4062 = vmatmul.mubr.bf16.vlgmr.msra.gmra.mxu1 %v880_v29  ;;  %1439 = vmatmul.mubr.bf16.vlgmr.msra.gmra.mxu0 %v880_v29 }
 0x388   :  { %4066 = vmatpush3.bf16.msra.mxu1 %v4406_v13  ;;  %4081 = vmatprep.mubr.msk.bf16.mxu1 %vm4862_vm0, %v4861_v0 }
 0x389   :  { %4067 = vmatprep.subr.bf16.mxu1 %v4861_v0  ;;  %4121 = vmatprep.mubr.msk.bf16.mxu0 %vm4862_vm0, %v4861_v0 }
 0x38c   :  { %4068 = vmatpush3.bf16.msra.mxu1 %v4407_v40 }
 0x38d   :  { %4069 = vmatprep.subr.bf16.mxu1 %v4861_v0 }
 0x390   :  { %4070 = vmatpush3.bf16.msra.mxu1 %v4408_v27 }
 0x391   :  { %4071 = vmatprep.subr.bf16.mxu1 %v4861_v0 }
 0x394   :  { %4072 = vmatpush3.bf16.msra.mxu1 %v4409_v1 }
 0x395   :  { %4073 = vmatprep.subr.bf16.mxu1 %v4861_v0 }
 0x398   :  { %4074 = vmatpush3.bf16.msra.mxu1 %v4410_v34 }
 0x399   :  { %4075 = vmatprep.subr.bf16.mxu1 %v4861_v0 }
 0x39c   :  { %4076 = vmatpush3.bf16.msra.mxu1 %v4411_v4 }
 0x39d   :  { %4077 = vmatprep.subr.bf16.mxu1 %v4861_v0 }
 0x3a0   :  { %4078 = vmatpush3.bf16.msra.mxu1 %v4412_v7 }
 0x3a1   :  { %4079 = vmatprep.subr.bf16.mxu1 %v4861_v0 }
 0x3a4   :  { %4080 = vmatpush3.bf16.msra.mxu1 %v4413_v10 }
 0x3a5   :  { %4085 = vmatprep.subr.bf16.mxu1 %v4861_v0 }
 0x3a7   :  { %4082 = vmatmul.mubr.bf16.vlgmr.msra.gmra.mxu1 %v5164_v51  ;;  %v4418_v51 = vld [vmem:[#allocation14 + $0x50] ss:$12 sps:$4 sm:$0xff]  }
 0x3a8   :  { %4086 = vmatpush3.bf16.msra.mxu1 %v4414_v23  ;;  %4101 = vmatprep.mubr.msk.bf16.mxu1 %vm4862_vm0, %v4861_v0 }
 0x3a9   :  { %4087 = vmatprep.subr.bf16.mxu1 %v4861_v0 }
 0x3ac   :  { %4088 = vmatpush3.bf16.msra.mxu1 %v4415_v25 }
 0x3ad   :  { %4089 = vmatprep.subr.bf16.mxu1 %v4861_v0 }
 0x3b0   :  { %4090 = vmatpush3.bf16.msra.mxu1 %v4416_v43 }
 0x3b1   :  { %4091 = vmatprep.subr.bf16.mxu1 %v4861_v0 }
 0x3b4   :  { %4092 = vmatpush3.bf16.msra.mxu1 %v4417_v48  ;;  %v4430_v48 = vld [vmem:[#allocation12 + $0xb0] ss:$12 sps:$4 sm:$0xff]  }
 0x3b5   :  { %4093 = vmatprep.subr.bf16.mxu1 %v4861_v0 }
 0x3b8   :  { %4094 = vmatpush3.bf16.msra.mxu1 %v4418_v51 }
 0x3b9   :  { %4095 = vmatprep.subr.bf16.mxu1 %v4861_v0 }
 0x3bc   :  { %4096 = vmatpush3.bf16.msra.mxu1 %v4419_v54  ;;  %v4431_v54 = vld [vmem:[#allocation12 + $0x98] ss:$12 sps:$4 sm:$0xff]  }
 0x3bd   :  { %4097 = vmatprep.subr.bf16.mxu1 %v4861_v0 }
 0x3c0   :  { %4098 = vmatpush3.bf16.msra.mxu1 %v4420_v57  ;;  %v4433_v57 = vld [vmem:[#allocation12 + $0x68] ss:$12 sps:$4 sm:$0xff]  }
 0x3c1   :  { %4099 = vmatprep.subr.bf16.mxu1 %v4861_v0 }
 0x3c4   :  { %4100 = vmatpush3.bf16.msra.mxu1 %v4421_v58 }
 0x3c5   :  { %1788 = vmatprep.subr.bf16.mxu1 %v5007_v20  ;;  %v4422_v20 = vld [vmem:[%s5763_s11 + $0x38] sm:$0xff]  }
 0x3c6   :  { %4106 = vmatpush3.bf16.msra.mxu0 %v4422_v20  ;;  %v4434_v20 = vld [vmem:[#allocation12 + $0x50] ss:$12 sps:$4 sm:$0xff]  }
 0x3c7   :  { %4102 = vmatmul.mubr.bf16.vlgmr.msra.gmra.mxu1 %v880_v29  ;;  %4107 = vmatprep.subr.bf16.mxu0 %v4861_v0 }
 0x3c8   :  { %1789 = vmatpush1.bf16.msra.mxu1 %v5009_v21  ;;  %1820 = vmatprep.mubr.bf16.mxu1 %v4865_v37  ;;  %v5292_v21 = vld [vmem:[#allocation2 + $0x8] sm:$0xf] }
 0x3c9   :  { %1790 = vmatprep.subr.bf16.mxu1 %v5011_v22  ;;  %v4423_v22 = vld [vmem:[%s5763_s11 + $0x30] sm:$0xff]  }
 0x3ca   :  { %4108 = vmatpush3.bf16.msra.mxu0 %v4423_v22 }
 0x3cb   :  { %4109 = vmatprep.subr.bf16.mxu0 %v4861_v0 }
 0x3cc   :  { %1791 = vmatpush1.bf16.msra.mxu1 %v5017_v26  ;;  %v4424_v26 = vld [vmem:[%s5763_s11 + $0x28] sm:$0xff]  }
 0x3cd   :  { %1792 = vmatprep.subr.bf16.mxu1 %v5020_v28  ;;  %v4425_v28 = vld [vmem:[%s5763_s11 + $0x20] sm:$0xff]  }
 0x3ce   :  { %4110 = vmatpush3.bf16.msra.mxu0 %v4424_v26 }
 0x3cf   :  { %4111 = vmatprep.subr.bf16.mxu0 %v4861_v0 }
 0x3d0   :  { %1793 = vmatpush1.bf16.msra.mxu1 %v5024_v33  ;;  %v4426_v33 = vld [vmem:[%s5763_s11 + $0x18] sm:$0xff]  }
 0x3d1   :  { %1794 = vmatprep.subr.bf16.mxu1 %v5027_v36  ;;  %v4427_v36 = vld [vmem:[%s5763_s11 + $0x10] sm:$0xff]  }
 0x3d2   :  { %4112 = vmatpush3.bf16.msra.mxu0 %v4425_v28  ;;  %v4435_v28 = vld [vmem:[#allocation12 + $0x38] ss:$12 sps:$4 sm:$0xff]  }
 0x3d3   :  { %4113 = vmatprep.subr.bf16.mxu0 %v4861_v0 }
 0x3d4   :  { %1795 = vmatpush1.bf16.msra.mxu1 %v5033_v42  ;;  %v4428_v42 = vld [vmem:[%s5763_s11 + $0x8] sm:$0xff]  }
 0x3d5   :  { %1796 = vmatprep.subr.bf16.mxu1 %v5037_v44  ;;  %v4429_v44 = vld [vmem:[%s5763_s11] sm:$0xff]  }
 0x3d6   :  { %4114 = vmatpush3.bf16.msra.mxu0 %v4426_v33 }
 0x3d7   :  { %4115 = vmatprep.subr.bf16.mxu0 %v4861_v0 }
 0x3d8   :  { %1797 = vmatpush1.bf16.msra.mxu1 %v5043_v46  ;;  %v5344_v46 = vld [vmem:[%s5764_s12] ss:$0 sm:$0xff] }
 0x3d9   :  { %1798 = vmatprep.subr.bf16.mxu1 %v5047_v47 }
 0x3da   :  { %4116 = vmatpush3.bf16.msra.mxu0 %v4427_v36  ;;  %v4436_v36 = vld [vmem:[#allocation12 + $0x20] ss:$12 sps:$4 sm:$0xff]  }
 0x3db   :  { %4117 = vmatprep.subr.bf16.mxu0 %v4861_v0 }
 0x3dc   :  { %1799 = vmatpush1.bf16.msra.mxu1 %v5050_v49 }
 0x3dd   :  { %1800 = vmatprep.subr.bf16.mxu1 %v5054_v50 }
 0x3de   :  { %4118 = vmatpush3.bf16.msra.mxu0 %v4428_v42  ;;  %v4437_v42 = vld [vmem:[#allocation12 + $0x8] ss:$12 sps:$4 sm:$0xff]  }
 0x3df   :  { %4119 = vmatprep.subr.bf16.mxu0 %v4861_v0 }
 0x3e0   :  { %1801 = vmatpush1.bf16.msra.mxu1 %v5057_v52 }
 0x3e1   :  { %1802 = vmatprep.subr.bf16.mxu1 %v5061_v53 }
 0x3e2   :  { %4120 = vmatpush3.bf16.msra.mxu0 %v4429_v44  ;;  %v4438_v44 = vld [vmem:[#allocation14 + $0xb0] ss:$12 sps:$4 sm:$0xff]  }
 0x3e3   :  { %4125 = vmatprep.subr.bf16.mxu0 %v4861_v0 }
 0x3e4   :  { %1803 = vmatpush1.bf16.msra.mxu1 %v5064_v55 }
 0x3e5   :  { %2029 = vmatprep.subr.bf16.mxu1 %v5068_v56 }
 0x3e7   :  { %1821 = vmatmul.mubr.bf16.vlgmr.msra.gmra.mxu1 %v5292_v21 }
 0x3e8   :  { %2030 = vmatpush1.bf16.msra.mxu1 %v5071_v59  ;;  %2061 = vmatprep.mubr.bf16.mxu1 %v4865_v37 }
 0x3e9   :  { %2031 = vmatprep.subr.bf16.mxu1 %v5075_v60 }
 0x3ec   :  { %2032 = vmatpush1.bf16.msra.mxu1 %v5078_v62 }
 0x3ed   :  { %2033 = vmatprep.subr.bf16.mxu1 %v5082_v63  ;;  %v1200_v63 = vadd.f32 %v5260_v38, %v5217_v16 }
 0x3f0   :  { %2034 = vmatpush1.bf16.msra.mxu1 %v5086_v2 }
 0x3f1   :  { %2035 = vmatprep.subr.bf16.mxu1 %v5090_v3 }
 0x3f4   :  { %2036 = vmatpush1.bf16.msra.mxu1 %v5093_v5 }
 0x3f5   :  { %2037 = vmatprep.subr.bf16.mxu1 %v5097_v6 }
 0x3f8   :  { %2038 = vmatpush1.bf16.msra.mxu1 %v5102_v8 }
 0x3f9   :  { %2039 = vmatprep.subr.bf16.mxu1 %v5106_v9 }
 0x3fc   :  { %2040 = vmatpush1.bf16.msra.mxu1 %v5109_v11  ;;  %v1202_v11 = vadd.f32 %v5263_v39, %v5227_v41 }
 0x3fd   :  { %2041 = vmatprep.subr.bf16.mxu1 %v5113_v12 }
 0x400   :  { %2042 = vmatpush1.bf16.msra.mxu1 %v5116_v14 }
 0x401   :  { %2043 = vmatprep.subr.bf16.mxu1 %v5124_v17 }
 0x404   :  { %2044 = vmatpush1.bf16.msra.mxu1 %v5126_v18 }
 0x405   :  { %4165 = vmatprep.subr.bf16.mxu1 %v4861_v0 }
 0x447   :  { %v985_v47 = vpop.f32.mrf.mxu1  ;;  %v1440_v49 = vpop.f32.mrf.mxu0 }
 0x448   :  { %v5347_v50 = vadd.f32 %v5344_v46, %v985_v47  ;;  %v1441_v62 = vadd.f32 %v1440_v49, %v5219_v19  ;;  %v4439_v47 = vld [vmem:[#allocation14 + $0x98] ss:$12 sps:$4 sm:$0xff]   ;;  %v4440_v49 = vld [vmem:[#allocation14 + $0x80] ss:$12 sps:$4 sm:$0xff]  }
 0x449   :  { %v4063_v52 = vpop.f32.mrf.mxu1  ;;  %v1442_v53 = vpop.f32.mrf.mxu0 }
 0x44a   :  { %991 = vmax.xlane.f32.xlu1 %v5347_v50  ;;  %v1487_v2 = vadd.f32 %v1441_v62, %v1200_v63  ;;  %v1443_v8 = vadd.f32 %v1442_v53, %v5225_v32  ;;  %v4441_v52 = vld [vmem:[#allocation14 + $0x68] ss:$12 sps:$4 sm:$0xff]   ;;  %v4442_v53 = vld [vmem:[#allocation14 + $0x50] ss:$12 sps:$4 sm:$0xff]  }
 0x44b   :  { %v988_v55 = vpop.f32.mrf.mxu1  ;;  %v1444_v56 = vpop.f32.mrf.mxu0  ;;  %v5394_v62 = vld [vmem:[#allocation12 + $0x94] ss:$12 sps:$4 sm:$0xff]   ;;  %v5398_v63 = vld [vmem:[#allocation12 + $0x90] ss:$12 sps:$4 sm:$0xff]  }
 0x44c   :  { %v3661_v3 = vmul.f32 -1.442695, %v1487_v2  ;;  %v1494_v14 = vadd.f32 %v1443_v8, %v1202_v11  ;;  %v4444_v55 = vld [vmem:[#allocation14 + $0x20] ss:$12 sps:$4 sm:$0xff]   ;;  %v4445_v56 = vld [vmem:[#allocation14 + $0x8] ss:$12 sps:$4 sm:$0xff]  }
 0x44d   :  { %v4064_v59 = vpop.f32.mrf.mxu1  ;;  %v1445_v60 = vpop.f32.mrf.mxu0  ;;  %v5402_v2 = vld [vmem:[#allocation12 + $0x7c] ss:$12 sps:$4 sm:$0xff]   ;;  %v5412_v8 = vld [vmem:[#allocation12 + $0x4c] ss:$12 sps:$4 sm:$0xff]   ;;  %v5419_v11 = vld [vmem:[#allocation12 + $0x34] ss:$12 sps:$4 sm:$0xff]  }
 0x44e   :  { %4564 = vpow2.f32 %v3661_v3  ;;  %v3662_v17 = vmul.f32 -1.442695, %v1494_v14  ;;  %v5390_v59 = vld [vmem:[#allocation12 + $0xa8] ss:$12 sps:$4 sm:$0xff]   ;;  %v5392_v60 = vld [vmem:[#allocation12 + $0xac] ss:$12 sps:$4 sm:$0xff]  }
 0x44f   :  { %v5404_v3 = vld [vmem:[#allocation12 + $0x78] ss:$12 sps:$4 sm:$0xff]  }
 0x450   :  { %4566 = vpow2.f32 %v3662_v17  ;;  %v4474_v14 = vld [vmem:[%s5763_s11 + $0x30] sm:$0xff]   ;;  %v5428_v17 = vld [vmem:[#allocation12 + $0x30] ss:$12 sps:$4 sm:$0xff]  }
 0x45b   :  { %v4565_v18 = vpop.eup %4564 }
 0x45c   :  { %v1491_v24 = vadd.f32 1.0, %v4565_v18  ;;  %v5432_v18 = vld [vmem:[#allocation12 + $0x1c] ss:$12 sps:$4 sm:$0xff]  }
 0x45d   :  { %v4567_v15 = vpop.eup %4566 }
 0x45e   :  { %4568 = vrcp.f32 %v1491_v24  ;;  %v1498_v13 = vadd.f32 1.0, %v4567_v15  ;;  %v5435_v24 = vld [vmem:[#allocation12 + $0x18] ss:$12 sps:$4 sm:$0xff]  }
 0x45f   :  { %v5439_v15 = vld [vmem:[#allocation12 + $0x4] ss:$12 sps:$4 sm:$0xff]  }
 0x460   :  { %4570 = vrcp.f32 %v1498_v13  ;;  %v5442_v13 = vld [vmem:[#allocation12] ss:$12 sps:$4 sm:$0xff]  }
 0x467   :  { %v1240_v5 = vpop.f32.mrf.mxu1 }
 0x468   :  { %v1241_v34 = vadd.f32 %v1240_v5, %v5235_v31  ;;  %v5408_v5 = vld [vmem:[#allocation12 + $0x64] ss:$12 sps:$4 sm:$0xff]  }
 0x469   :  { %v4083_v6 = vpop.f32.mrf.mxu1 }
 0x46a   :  { %v5410_v6 = vld [vmem:[#allocation12 + $0x60] ss:$12 sps:$4 sm:$0xff]  }
 0x46b   :  { %v1243_v9 = vpop.f32.mrf.mxu1  ;;  %v4569_v27 = vpop.eup %4568 }
 0x46c   :  { %v5416_v9 = vld [vmem:[#allocation12 + $0x48] ss:$12 sps:$4 sm:$0xff]  }
 0x46d   :  { %v4084_v12 = vpop.f32.mrf.mxu1  ;;  %v4571_v25 = vpop.eup %4570 }
 0x46e   :  { %v1504_v38 = vsub.f32 1.0, %v4571_v25  ;;  %v1506_v35 = vmul.f32 %v4571_v25, %v5241_v61  ;;  %v4432_v61 = vld [vmem:[#allocation12 + $0x80] ss:$12 sps:$4 sm:$0xff]   ;;  %v5475_v25 = vld [vmem:[#allocation14 + $0x64] ss:$12 sps:$4 sm:$0xff]  }
 0x46f   :  { %v4470_v12 = vld [vmem:[%s5763_s11 + $0x38] sm:$0xff]  }
 0x487   :  { %v1481_v29 = vpop.f32.mrf.mxu1 }
 0x488   :  { %v1482_v40 = vadd.f32 %v1481_v29, %v5233_v30  ;;  %v5445_v29 = vld [vmem:[#allocation14 + $0xac] ss:$12 sps:$4 sm:$0xff]  }
 0x489   :  { %v4103_v1 = vpop.f32.mrf.mxu1 }
 0x48a   :  { %v1501_v4 = vmul.f32 %v4569_v27, %v1482_v40  ;;  %v5448_v40 = vld [vmem:[#allocation14 + $0xa8] ss:$12 sps:$4 sm:$0xff]   ;;  %v5450_v27 = vld [vmem:[#allocation2 + $0xc] sm:$0xf] }
 0x48b   :  { %v1484_v7 = vpop.f32.mrf.mxu1  ;;  %v5453_v1 = vld [vmem:[#allocation14 + $0x94] ss:$12 sps:$4 sm:$0xff]  }
 0x48c   :  { %v1502_v10 = vadd.f32 %v1501_v4, %v1241_v34  ;;  %v5457_v34 = vld [vmem:[#allocation14 + $0x90] ss:$12 sps:$4 sm:$0xff]  }
 0x48d   :  { %v4104_v23 = vpop.f32.mrf.mxu1  ;;  %v4478_v4 = vld [vmem:[%s5763_s11 + $0x28] sm:$0xff]  }
 0x48e   :  { %4572 = vtanh.f32 %v1502_v10  ;;  %v5465_v7 = vld [vmem:[#allocation14 + $0x7c] ss:$12 sps:$4 sm:$0xff]   ;;  %v5467_v10 = vld [vmem:[#allocation14 + $0x78] ss:$12 sps:$4 sm:$0xff]  }
 0x48f   :  { %v4482_v23 = vld [vmem:[%s5763_s11 + $0x20] sm:$0xff]  }
 0x49b   :  { %v4573_v39 = vpop.eup %4572 }
 0x49c   :  { %v1505_v43 = vmul.f32 %v4573_v39, %v1504_v38  ;;  %v5477_v38 = vld [vmem:[#allocation14 + $0x60] ss:$12 sps:$4 sm:$0xff]  }
 0x49d   :  { %v4486_v39 = vld [vmem:[%s5763_s11 + $0x18] sm:$0xff]  }
 0x49e   :  { %v5359_v45 = vadd.f32 %v1506_v35, %v1505_v43  ;;  %v5483_v43 = vld [vmem:[#allocation14 + $0x4c] ss:$12 sps:$4 sm:$0xff]   ;;  %v5487_v35 = vld [vmem:[#allocation14 + $0x48] ss:$12 sps:$4 sm:$0xff]  }
 0x4a0   :  { %v1508_v51 = vpack.c.bf16 %v5359_v45, %v5359_v45 }
 0x4a2   :  { %4122 = vmatmul.mubr.bf16.vlgmr.msra.gmra.mxu0 %v1508_v51  ;;  %2062 = vmatmul.mubr.bf16.vlgmr.msra.gmra.mxu1 %v1508_v51 }
 0x4a3   :  { %4126 = vmatpush3.bf16.msra.mxu0 %v4430_v48  ;;  %4141 = vmatprep.mubr.msk.bf16.mxu0 %vm4862_vm0, %v4861_v0  ;;  %v5490_v48 = vld [vmem:[#allocation14 + $0x34] ss:$12 sps:$4 sm:$0xff]  }
 0x4a4   :  { %4127 = vmatprep.subr.bf16.mxu0 %v4861_v0  ;;  %4181 = vmatprep.mubr.msk.bf16.mxu1 %vm4862_vm0, %v4861_v0 }
 0x4a5   :  { %4166 = vmatpush3.bf16.msra.mxu1 %v4470_v12 }
 0x4a6   :  { %4167 = vmatprep.subr.bf16.mxu1 %v4861_v0 }
 0x4a7   :  { %4128 = vmatpush3.bf16.msra.mxu0 %v4431_v54  ;;  %v5370_v58 = vpop.f32.mrf.mxu1  ;;  %v5497_v54 = vld [vmem:[#allocation14 + $0x30] ss:$12 sps:$4 sm:$0xff]  }
 0x4a8   :  { %4129 = vmatprep.subr.bf16.mxu0 %v4861_v0  ;;  %v1823_v12 = vadd.f32 %v5370_v58, %v5217_v16 }
 0x4a9   :  { %v5373_v22 = vpop.f32.mrf.mxu1  ;;  %4168 = vmatpush3.bf16.msra.mxu1 %v4474_v14 }
 0x4aa   :  { %4169 = vmatprep.subr.bf16.mxu1 %v4861_v0 }
 0x4ab   :  { %4130 = vmatpush3.bf16.msra.mxu0 %v4432_v61  ;;  %v1826_v26 = vpop.f32.mrf.mxu1  ;;  %v5500_v61 = vld [vmem:[#allocation14 + $0x1c] ss:$12 sps:$4 sm:$0xff]  }
 0x4ac   :  { %4131 = vmatprep.subr.bf16.mxu0 %v4861_v0  ;;  %v5510_v26 = vld [vmem:[#allocation14 + $0x4] ss:$12 sps:$4 sm:$0xff]  }
 0x4ad   :  { %v1827_v33 = vpop.f32.mrf.mxu1  ;;  %4170 = vmatpush3.bf16.msra.mxu1 %v4478_v4 }
 0x4ae   :  { %4171 = vmatprep.subr.bf16.mxu1 %v4861_v0  ;;  %v5517_v33 = vld [vmem:[#allocation14] ss:$12 sps:$4 sm:$0xff]  }
 0x4af   :  { %4132 = vmatpush3.bf16.msra.mxu0 %v4433_v57  ;;  %v4494_v57 = vld [vmem:[%s5763_s11 + $0x8] sm:$0xff]  }
 0x4b0   :  { %4133 = vmatprep.subr.bf16.mxu0 %v4861_v0 }
 0x4b1   :  { %4172 = vmatpush3.bf16.msra.mxu1 %v4482_v23 }
 0x4b2   :  { %4173 = vmatprep.subr.bf16.mxu1 %v4861_v0 }
 0x4b3   :  { %4134 = vmatpush3.bf16.msra.mxu0 %v4434_v20  ;;  %v5507_v20 = vld [vmem:[#allocation14 + $0x18] ss:$12 sps:$4 sm:$0xff]  }
 0x4b4   :  { %4135 = vmatprep.subr.bf16.mxu0 %v4861_v0 }
 0x4b5   :  { %4174 = vmatpush3.bf16.msra.mxu1 %v4486_v39 }
 0x4b6   :  { %4175 = vmatprep.subr.bf16.mxu1 %v4861_v0 }
 0x4b7   :  { %4136 = vmatpush3.bf16.msra.mxu0 %v4435_v28  ;;  %v4498_v28 = vld [vmem:[%s5763_s11] sm:$0xff]  }
 0x4b8   :  { %4137 = vmatprep.subr.bf16.mxu0 %v4861_v0 }
 0x4bb   :  { %4138 = vmatpush3.bf16.msra.mxu0 %v4436_v36 }
 0x4bc   :  { %4139 = vmatprep.subr.bf16.mxu0 %v4861_v0 }
 0x4bf   :  { %4140 = vmatpush3.bf16.msra.mxu0 %v4437_v42 }
 0x4c0   :  { %4145 = vmatprep.subr.bf16.mxu0 %v4861_v0 }
 0x4c2   :  { %4142 = vmatmul.mubr.bf16.vlgmr.msra.gmra.mxu0 %v5292_v21  ;;  %v4443_v21 = vld [vmem:[#allocation14 + $0x38] ss:$12 sps:$4 sm:$0xff]  }
 0x4c3   :  { %4146 = vmatpush3.bf16.msra.mxu0 %v4438_v44  ;;  %4161 = vmatprep.mubr.msk.bf16.mxu0 %vm4862_vm0, %v4861_v0 }
 0x4c4   :  { %4147 = vmatprep.subr.bf16.mxu0 %v4861_v0 }
 0x4c7   :  { %4148 = vmatpush3.bf16.msra.mxu0 %v4439_v47 }
 0x4c8   :  { %4149 = vmatprep.subr.bf16.mxu0 %v4861_v0 }
 0x4cb   :  { %4150 = vmatpush3.bf16.msra.mxu0 %v4440_v49 }
 0x4cc   :  { %4151 = vmatprep.subr.bf16.mxu0 %v4861_v0 }
 0x4cf   :  { %4152 = vmatpush3.bf16.msra.mxu0 %v4441_v52 }
 0x4d0   :  { %4153 = vmatprep.subr.bf16.mxu0 %v4861_v0 }
 0x4d3   :  { %4154 = vmatpush3.bf16.msra.mxu0 %v4442_v53 }
 0x4d4   :  { %4155 = vmatprep.subr.bf16.mxu0 %v4861_v0 }
 0x4d7   :  { %4156 = vmatpush3.bf16.msra.mxu0 %v4443_v21 }
 0x4d8   :  { %4157 = vmatprep.subr.bf16.mxu0 %v4861_v0 }
 0x4db   :  { %4158 = vmatpush3.bf16.msra.mxu0 %v4444_v55 }
 0x4dc   :  { %4159 = vmatprep.subr.bf16.mxu0 %v4861_v0 }
 0x4df   :  { %4160 = vmatpush3.bf16.msra.mxu0 %v4445_v56 }
 0x4e0   :  { %2411 = vmatprep.subr.bf16.mxu0 %v5392_v60 }
 0x4e2   :  { %4162 = vmatmul.mubr.bf16.vlgmr.msra.gmra.mxu0 %v1508_v51  ;;  %v4490_v51 = vld [vmem:[%s5763_s11 + $0x10] sm:$0xff]  }
 0x4e3   :  { %2443 = vmatprep.mubr.bf16.mxu0 %v4865_v37  ;;  %2412 = vmatpush1.bf16.msra.mxu0 %v5390_v59 }
 0x4e4   :  { %2413 = vmatprep.subr.bf16.mxu0 %v5394_v62  ;;  %4176 = vmatpush3.bf16.msra.mxu1 %v4490_v51 }
 0x4e5   :  { %4177 = vmatprep.subr.bf16.mxu1 %v4861_v0 }
 0x4e7   :  { %2414 = vmatpush1.bf16.msra.mxu0 %v5398_v63 }
 0x4e8   :  { %2415 = vmatprep.subr.bf16.mxu0 %v5402_v2  ;;  %4178 = vmatpush3.bf16.msra.mxu1 %v4494_v57 }
 0x4e9   :  { %4179 = vmatprep.subr.bf16.mxu1 %v4861_v0 }
 0x4eb   :  { %2416 = vmatpush1.bf16.msra.mxu0 %v5404_v3 }
 0x4ec   :  { %2417 = vmatprep.subr.bf16.mxu0 %v5408_v5  ;;  %4180 = vmatpush3.bf16.msra.mxu1 %v4498_v28  ;;  %v1825_v28 = vadd.f32 %v5373_v22, %v5227_v41 }
 0x4ed   :  { %4185 = vmatprep.subr.bf16.mxu1 %v4861_v0 }
 0x4ef   :  { %2418 = vmatpush1.bf16.msra.mxu0 %v5410_v6 }
 0x4f0   :  { %2419 = vmatprep.subr.bf16.mxu0 %v5412_v8 }
 0x4f3   :  { %2420 = vmatpush1.bf16.msra.mxu0 %v5416_v9 }
 0x4f4   :  { %2421 = vmatprep.subr.bf16.mxu0 %v5419_v11 }
 0x4f7   :  { %2422 = vmatpush1.bf16.msra.mxu0 %v5428_v17 }
 0x4f8   :  { %2423 = vmatprep.subr.bf16.mxu0 %v5432_v18 }
 0x4fb   :  { %2424 = vmatpush1.bf16.msra.mxu0 %v5435_v24 }
 0x4fc   :  { %2425 = vmatprep.subr.bf16.mxu0 %v5439_v15 }
 0x4ff   :  { %2426 = vmatpush1.bf16.msra.mxu0 %v5442_v13 }
 0x500   :  { %2652 = vmatprep.subr.bf16.mxu0 %v5445_v29 }
 0x502   :  { %2444 = vmatmul.mubr.bf16.vlgmr.msra.gmra.mxu0 %v5450_v27 }
 0x503   :  { %2653 = vmatpush1.bf16.msra.mxu0 %v5448_v40  ;;  %2684 = vmatprep.mubr.bf16.mxu0 %v4865_v37 }
 0x504   :  { %2654 = vmatprep.subr.bf16.mxu0 %v5453_v1 }
 0x507   :  { %2655 = vmatpush1.bf16.msra.mxu0 %v5457_v34 }
 0x508   :  { %2656 = vmatprep.subr.bf16.mxu0 %v5465_v7 }
 0x50b   :  { %2657 = vmatpush1.bf16.msra.mxu0 %v5467_v10 }
 0x50c   :  { %2658 = vmatprep.subr.bf16.mxu0 %v5475_v25 }
 0x50f   :  { %2659 = vmatpush1.bf16.msra.mxu0 %v5477_v38 }
 0x510   :  { %2660 = vmatprep.subr.bf16.mxu0 %v5483_v43 }
 0x513   :  { %2661 = vmatpush1.bf16.msra.mxu0 %v5487_v35 }
 0x514   :  { %2662 = vmatprep.subr.bf16.mxu0 %v5490_v48 }
 0x517   :  { %2663 = vmatpush1.bf16.msra.mxu0 %v5497_v54 }
 0x518   :  { %2664 = vmatprep.subr.bf16.mxu0 %v5500_v61 }
 0x51b   :  { %2665 = vmatpush1.bf16.msra.mxu0 %v5507_v20 }
 0x51c   :  { %2666 = vmatprep.subr.bf16.mxu0 %v5510_v26 }
 0x51f   :  { %2667 = vmatpush1.bf16.msra.mxu0 %v5517_v33 }
 0x520   :  { %4225 = vmatprep.subr.bf16.mxu0 %v4861_v0 }
 0x562   :  { %v1607_v36 = vpop.f32.mrf.mxu0  ;;  %v2063_v42 = vpop.f32.mrf.mxu1 }
 0x563   :  { %v5524_v44 = vadd.f32 %v5344_v46, %v1607_v36  ;;  %v2064_v56 = vadd.f32 %v2063_v42, %v5219_v19 }
 0x564   :  { %v4123_v47 = vpop.f32.mrf.mxu0  ;;  %v2065_v49 = vpop.f32.mrf.mxu1 }
 0x565   :  { %1613 = vmax.xlane.f32.xlu0 %v5524_v44  ;;  %v2110_v14 = vadd.f32 %v2064_v56, %v1823_v12  ;;  %v2066_v51 = vadd.f32 %v2065_v49, %v5225_v32 }
 0x566   :  { %v1610_v52 = vpop.f32.mrf.mxu0  ;;  %v2067_v53 = vpop.f32.mrf.mxu1 }
 0x567   :  { %v3719_v4 = vmul.f32 -1.442695, %v2110_v14  ;;  %v2117_v47 = vadd.f32 %v2066_v51, %v1825_v28 }
 0x568   :  { %v4124_v21 = vpop.f32.mrf.mxu0  ;;  %v2068_v55 = vpop.f32.mrf.mxu1 }
 0x569   :  { %4574 = vpow2.f32 %v3719_v4  ;;  %v3720_v52 = vmul.f32 -1.442695, %v2117_v47 }
 0x56b   :  { %4576 = vpow2.f32 %v3720_v52 }
 0x576   :  { %v4575_v53 = vpop.eup %4574 }
 0x577   :  { %v2114_v42 = vadd.f32 1.0, %v4575_v53 }
 0x578   :  { %v4577_v21 = vpop.eup %4576 }
 0x579   :  { %4578 = vrcp.f32 %v2114_v42  ;;  %v2121_v58 = vadd.f32 1.0, %v4577_v21  ;;  %v4502_v42 = vld [vmem:[#allocation12 + $0xb0] ss:$12 sps:$4 sm:$0xff]  }
 0x57b   :  { %4580 = vrcp.f32 %v2121_v58  ;;  %v4505_v58 = vld [vmem:[#allocation12 + $0x68] ss:$12 sps:$4 sm:$0xff]  }
 0x582   :  { %v1863_v23 = vpop.f32.mrf.mxu0 }
 0x583   :  { %v1864_v49 = vadd.f32 %v1863_v23, %v5235_v31  ;;  %v4503_v23 = vld [vmem:[#allocation12 + $0x98] ss:$12 sps:$4 sm:$0xff]  }
 0x584   :  { %v4143_v39 = vpop.f32.mrf.mxu0 }
 0x586   :  { %v1866_v57 = vpop.f32.mrf.mxu0  ;;  %v4579_v12 = vpop.eup %4578 }
 0x588   :  { %v4144_v36 = vpop.f32.mrf.mxu0  ;;  %v4581_v51 = vpop.eup %4580 }
 0x589   :  { %v2127_v28 = vsub.f32 1.0, %v4581_v51  ;;  %v2129_v52 = vmul.f32 %v4581_v51, %v5359_v45  ;;  %v4504_v45 = vld [vmem:[#allocation12 + $0x80] ss:$12 sps:$4 sm:$0xff]  }
 0x58a   :  { %v4512_v51 = vld [vmem:[#allocation14 + $0x80] ss:$12 sps:$4 sm:$0xff]  }
 0x5a2   :  { %v2104_v55 = vpop.f32.mrf.mxu0 }
 0x5a3   :  { %v2105_v56 = vadd.f32 %v2104_v55, %v5233_v30  ;;  %v4506_v55 = vld [vmem:[#allocation12 + $0x50] ss:$12 sps:$4 sm:$0xff]  }
 0x5a4   :  { %v4163_v14 = vpop.f32.mrf.mxu0 }
 0x5a5   :  { %v2124_v4 = vmul.f32 %v4579_v12, %v2105_v56  ;;  %v4507_v56 = vld [vmem:[#allocation12 + $0x38] ss:$12 sps:$4 sm:$0xff]   ;;  %v4508_v12 = vld [vmem:[#allocation12 + $0x20] ss:$12 sps:$4 sm:$0xff]   ;;  %v4509_v14 = vld [vmem:[#allocation12 + $0x8] ss:$12 sps:$4 sm:$0xff]  }
 0x5a6   :  { %v2107_v39 = vpop.f32.mrf.mxu0 }
 0x5a7   :  { %v2125_v22 = vadd.f32 %v2124_v4, %v1864_v49  ;;  %v4510_v49 = vld [vmem:[#allocation14 + $0xb0] ss:$12 sps:$4 sm:$0xff]   ;;  %v4511_v39 = vld [vmem:[#allocation14 + $0x98] ss:$12 sps:$4 sm:$0xff]  }
 0x5a8   :  { %v4164_v57 = vpop.f32.mrf.mxu0 }
 0x5a9   :  { %4582 = vtanh.f32 %v2125_v22 }
 0x5b6   :  { %v4583_v36 = vpop.eup %4582 }
 0x5b7   :  { %v2128_v47 = vmul.f32 %v4583_v36, %v2127_v28  ;;  %v4513_v36 = vld [vmem:[#allocation14 + $0x68] ss:$12 sps:$4 sm:$0xff]  }
 0x5b9   :  { %v5536_v53 = vadd.f32 %v2129_v52, %v2128_v47  ;;  %v4515_v47 = vld [vmem:[#allocation14 + $0x38] ss:$12 sps:$4 sm:$0xff]   ;;  %v4516_v52 = vld [vmem:[#allocation14 + $0x20] ss:$12 sps:$4 sm:$0xff]  }
 0x5bb   :  { %v2131_v21 = vpack.c.bf16 %v5536_v53, %v5536_v53 }
 0x5bd   :  { %4182 = vmatmul.mubr.bf16.vlgmr.msra.gmra.mxu1 %v2131_v21  ;;  %2685 = vmatmul.mubr.bf16.vlgmr.msra.gmra.mxu0 %v2131_v21 }
 0x5be   :  { %4186 = vmatpush3.bf16.msra.mxu1 %v4502_v42  ;;  %4201 = vmatprep.mubr.msk.bf16.mxu1 %vm4862_vm0, %v4861_v0  ;;  %v4517_v42 = vld [vmem:[#allocation14 + $0x8] ss:$12 sps:$4 sm:$0xff]  }
 0x5bf   :  { %4187 = vmatprep.subr.bf16.mxu1 %v4861_v0  ;;  %4241 = vmatprep.mubr.msk.bf16.mxu0 %vm4862_vm0, %v4861_v0 }
 0x5c2   :  { %4188 = vmatpush3.bf16.msra.mxu1 %v4503_v23  ;;  %v5553_v4 = vpop.f32.mrf.mxu0 }
 0x5c3   :  { %4189 = vmatprep.subr.bf16.mxu1 %v4861_v0 }
 0x5c4   :  { %v5558_v22 = vpop.f32.mrf.mxu0 }
 0x5c6   :  { %4190 = vmatpush3.bf16.msra.mxu1 %v4504_v45  ;;  %v2449_v57 = vpop.f32.mrf.mxu0 }
 0x5c7   :  { %4191 = vmatprep.subr.bf16.mxu1 %v4861_v0 }
 0x5c8   :  { %v2450_v28 = vpop.f32.mrf.mxu0 }
 0x5ca   :  { %4192 = vmatpush3.bf16.msra.mxu1 %v4505_v58 }
 0x5cb   :  { %4193 = vmatprep.subr.bf16.mxu1 %v4861_v0 }
 0x5ce   :  { %4194 = vmatpush3.bf16.msra.mxu1 %v4506_v55 }
 0x5cf   :  { %4195 = vmatprep.subr.bf16.mxu1 %v4861_v0 }
 0x5d2   :  { %4196 = vmatpush3.bf16.msra.mxu1 %v4507_v56 }
 0x5d3   :  { %4197 = vmatprep.subr.bf16.mxu1 %v4861_v0 }
 0x5d6   :  { %4198 = vmatpush3.bf16.msra.mxu1 %v4508_v12 }
 0x5d7   :  { %4199 = vmatprep.subr.bf16.mxu1 %v4861_v0 }
 0x5da   :  { %4200 = vmatpush3.bf16.msra.mxu1 %v4509_v14 }
 0x5db   :  { %4205 = vmatprep.subr.bf16.mxu1 %v4861_v0 }
 0x5dd   :  { %4202 = vmatmul.mubr.bf16.vlgmr.msra.gmra.mxu1 %v5450_v27  ;;  %v4514_v27 = vld [vmem:[#allocation14 + $0x50] ss:$12 sps:$4 sm:$0xff]  }
 0x5de   :  { %4206 = vmatpush3.bf16.msra.mxu1 %v4510_v49  ;;  %4221 = vmatprep.mubr.msk.bf16.mxu1 %vm4862_vm0, %v4861_v0 }
 0x5df   :  { %4207 = vmatprep.subr.bf16.mxu1 %v4861_v0 }
 0x5e2   :  { %4208 = vmatpush3.bf16.msra.mxu1 %v4511_v39 }
 0x5e3   :  { %4209 = vmatprep.subr.bf16.mxu1 %v4861_v0 }
 0x5e6   :  { %4210 = vmatpush3.bf16.msra.mxu1 %v4512_v51 }
 0x5e7   :  { %4211 = vmatprep.subr.bf16.mxu1 %v4861_v0 }
 0x5ea   :  { %4212 = vmatpush3.bf16.msra.mxu1 %v4513_v36 }
 0x5eb   :  { %4213 = vmatprep.subr.bf16.mxu1 %v4861_v0 }
 0x5ee   :  { %4214 = vmatpush3.bf16.msra.mxu1 %v4514_v27  ;;  %v4526_v27 = vld [vmem:[#allocation12 + $0xb0] ss:$12 sps:$4 sm:$0xff]  }
 0x5ef   :  { %4215 = vmatprep.subr.bf16.mxu1 %v4861_v0 }
 0x5f2   :  { %4216 = vmatpush3.bf16.msra.mxu1 %v4515_v47 }
 0x5f3   :  { %4217 = vmatprep.subr.bf16.mxu1 %v4861_v0 }
 0x5f6   :  { %4218 = vmatpush3.bf16.msra.mxu1 %v4516_v52  ;;  %v4527_v52 = vld [vmem:[#allocation12 + $0x98] ss:$12 sps:$4 sm:$0xff]  }
 0x5f7   :  { %4219 = vmatprep.subr.bf16.mxu1 %v4861_v0 }
 0x5fa   :  { %4220 = vmatpush3.bf16.msra.mxu1 %v4517_v42  ;;  %v4529_v42 = vld [vmem:[#allocation12 + $0x68] ss:$12 sps:$4 sm:$0xff]  }
 0x5fb   :  { %3034 = vmatprep.subr.bf16.mxu1 %v5392_v60  ;;  %v5587_v60 = vld [vmem:[#allocation2 + $0x10] sm:$0xf] }
 0x5fd   :  { %4222 = vmatmul.mubr.bf16.vlgmr.msra.gmra.mxu1 %v2131_v21 }
 0x5fe   :  { %3035 = vmatpush1.bf16.msra.mxu1 %v5390_v59  ;;  %3066 = vmatprep.mubr.bf16.mxu1 %v4865_v37  ;;  %v4518_v59 = vld [vmem:[%s5763_s11 + $0x38] sm:$0xff]  }
 0x5ff   :  { %3036 = vmatprep.subr.bf16.mxu1 %v5394_v62  ;;  %4226 = vmatpush3.bf16.msra.mxu0 %v4518_v59  ;;  %v4519_v62 = vld [vmem:[%s5763_s11 + $0x30] sm:$0xff]  }
 0x600   :  { %4227 = vmatprep.subr.bf16.mxu0 %v4861_v0 }
 0x602   :  { %3037 = vmatpush1.bf16.msra.mxu1 %v5398_v63  ;;  %v4521_v63 = vld [vmem:[%s5763_s11 + $0x20] sm:$0xff]  }
 0x603   :  { %3038 = vmatprep.subr.bf16.mxu1 %v5402_v2  ;;  %4228 = vmatpush3.bf16.msra.mxu0 %v4519_v62  ;;  %v4522_v2 = vld [vmem:[%s5763_s11 + $0x18] sm:$0xff]  }
 0x604   :  { %4229 = vmatprep.subr.bf16.mxu0 %v4861_v0  ;;  %v4530_v62 = vld [vmem:[#allocation12 + $0x50] ss:$12 sps:$4 sm:$0xff]  }
 0x606   :  { %3039 = vmatpush1.bf16.msra.mxu1 %v5404_v3  ;;  %v4523_v3 = vld [vmem:[%s5763_s11 + $0x10] sm:$0xff]  }
 0x607   :  { %3040 = vmatprep.subr.bf16.mxu1 %v5408_v5  ;;  %v4524_v5 = vld [vmem:[%s5763_s11 + $0x8] sm:$0xff]  }
 0x60a   :  { %3041 = vmatpush1.bf16.msra.mxu1 %v5410_v6  ;;  %v4525_v6 = vld [vmem:[%s5763_s11] sm:$0xff]  }
 0x60b   :  { %3042 = vmatprep.subr.bf16.mxu1 %v5412_v8 }
 0x60e   :  { %3043 = vmatpush1.bf16.msra.mxu1 %v5416_v9 }
 0x60f   :  { %3044 = vmatprep.subr.bf16.mxu1 %v5419_v11 }
 0x612   :  { %3045 = vmatpush1.bf16.msra.mxu1 %v5428_v17 }
 0x613   :  { %3046 = vmatprep.subr.bf16.mxu1 %v5432_v18 }
 0x616   :  { %3047 = vmatpush1.bf16.msra.mxu1 %v5435_v24 }
 0x617   :  { %3048 = vmatprep.subr.bf16.mxu1 %v5439_v15 }
 0x61a   :  { %3049 = vmatpush1.bf16.msra.mxu1 %v5442_v13 }
 0x61b   :  { %3275 = vmatprep.subr.bf16.mxu1 %v5445_v29 }
 0x61d   :  { %3067 = vmatmul.mubr.bf16.vlgmr.msra.gmra.mxu1 %v5587_v60 }
 0x61e   :  { %3276 = vmatpush1.bf16.msra.mxu1 %v5448_v40  ;;  %3307 = vmatprep.mubr.bf16.mxu1 %v4865_v37  ;;  %v4520_v37 = vld [vmem:[%s5763_s11 + $0x28] sm:$0xff]  }
 0x61f   :  { %3277 = vmatprep.subr.bf16.mxu1 %v5453_v1  ;;  %4230 = vmatpush3.bf16.msra.mxu0 %v4520_v37  ;;  %v2446_v1 = vadd.f32 %v5553_v4, %v5217_v16 }
 0x620   :  { %4231 = vmatprep.subr.bf16.mxu0 %v4861_v0 }
 0x622   :  { %3278 = vmatpush1.bf16.msra.mxu1 %v5457_v34 }
 0x623   :  { %3279 = vmatprep.subr.bf16.mxu1 %v5465_v7  ;;  %4232 = vmatpush3.bf16.msra.mxu0 %v4521_v63 }
 0x624   :  { %4233 = vmatprep.subr.bf16.mxu0 %v4861_v0 }
 0x626   :  { %3280 = vmatpush1.bf16.msra.mxu1 %v5467_v10 }
 0x627   :  { %3281 = vmatprep.subr.bf16.mxu1 %v5475_v25  ;;  %4234 = vmatpush3.bf16.msra.mxu0 %v4522_v2  ;;  %v4531_v2 = vld [vmem:[#allocation12 + $0x38] ss:$12 sps:$4 sm:$0xff]  }
 0x628   :  { %4235 = vmatprep.subr.bf16.mxu0 %v4861_v0 }
 0x62a   :  { %3282 = vmatpush1.bf16.msra.mxu1 %v5477_v38 }
 0x62b   :  { %3283 = vmatprep.subr.bf16.mxu1 %v5483_v43  ;;  %4236 = vmatpush3.bf16.msra.mxu0 %v4523_v3 }
 0x62c   :  { %4237 = vmatprep.subr.bf16.mxu0 %v4861_v0 }
 0x62e   :  { %3284 = vmatpush1.bf16.msra.mxu1 %v5487_v35  ;;  %v2448_v35 = vadd.f32 %v5558_v22, %v5227_v41 }
 0x62f   :  { %3285 = vmatprep.subr.bf16.mxu1 %v5490_v48  ;;  %4238 = vmatpush3.bf16.msra.mxu0 %v4524_v5  ;;  %v4532_v5 = vld [vmem:[#allocation12 + $0x20] ss:$12 sps:$4 sm:$0xff]  }
 0x630   :  { %4239 = vmatprep.subr.bf16.mxu0 %v4861_v0 }
 0x632   :  { %3286 = vmatpush1.bf16.msra.mxu1 %v5497_v54 }
 0x633   :  { %3287 = vmatprep.subr.bf16.mxu1 %v5500_v61  ;;  %4240 = vmatpush3.bf16.msra.mxu0 %v4525_v6  ;;  %v4533_v6 = vld [vmem:[#allocation12 + $0x8] ss:$12 sps:$4 sm:$0xff]  }
 0x634   :  { %4245 = vmatprep.subr.bf16.mxu0 %v4861_v0 }
 0x636   :  { %3288 = vmatpush1.bf16.msra.mxu1 %v5507_v20 }
 0x637   :  { %3289 = vmatprep.subr.bf16.mxu1 %v5510_v26 }
 0x63a   :  { %3290 = vmatpush1.bf16.msra.mxu1 %v5517_v33 }
 0x63b   :  { %4285 = vmatprep.subr.bf16.mxu1 %v4861_v0 }
 0x67d   :  { %v2230_v8 = vpop.f32.mrf.mxu1  ;;  %v2686_v9 = vpop.f32.mrf.mxu0 }
 0x67e   :  { %v5637_v11 = vadd.f32 %v5344_v46, %v2230_v8  ;;  %v2687_v40 = vadd.f32 %v2686_v9, %v5219_v19  ;;  %v4534_v8 = vld [vmem:[#allocation14 + $0xb0] ss:$12 sps:$4 sm:$0xff]   ;;  %v4535_v9 = vld [vmem:[#allocation14 + $0x98] ss:$12 sps:$4 sm:$0xff]  }
 0x67f   :  { %v4183_v17 = vpop.f32.mrf.mxu1  ;;  %v2688_v18 = vpop.f32.mrf.mxu0 }
 0x680   :  { %2236 = vmax.xlane.f32.xlu0 %v5637_v11  ;;  %v2733_v34 = vadd.f32 %v2687_v40, %v2446_v1  ;;  %v2689_v38 = vadd.f32 %v2688_v18, %v5225_v32  ;;  %v4536_v17 = vld [vmem:[#allocation14 + $0x80] ss:$12 sps:$4 sm:$0xff]   ;;  %v4537_v18 = vld [vmem:[#allocation14 + $0x68] ss:$12 sps:$4 sm:$0xff]  }
 0x681   :  { %v2233_v24 = vpop.f32.mrf.mxu1  ;;  %v2690_v15 = vpop.f32.mrf.mxu0  ;;  %v4543_v40 = vld [vmem:[%s5763_s11 + $0x30] sm:$0xff]   ;;  %v4544_v1 = vld [vmem:[%s5763_s11 + $0x28] sm:$0xff]  }
 0x682   :  { %v3777_v7 = vmul.f32 -1.442695, %v2733_v34  ;;  %v2740_v54 = vadd.f32 %v2689_v38, %v2448_v35  ;;  %v4538_v24 = vld [vmem:[#allocation14 + $0x50] ss:$12 sps:$4 sm:$0xff]   ;;  %v4540_v15 = vld [vmem:[#allocation14 + $0x20] ss:$12 sps:$4 sm:$0xff]  }
 0x683   :  { %v4184_v13 = vpop.f32.mrf.mxu1  ;;  %v2691_v29 = vpop.f32.mrf.mxu0  ;;  %v4545_v34 = vld [vmem:[%s5763_s11 + $0x20] sm:$0xff]  }
 0x684   :  { %4584 = vpow2.f32 %v3777_v7  ;;  %v3778_v61 = vmul.f32 -1.442695, %v2740_v54  ;;  %v4541_v13 = vld [vmem:[#allocation14 + $0x8] ss:$12 sps:$4 sm:$0xff]  }
 0x685   :  { %v4542_v29 = vld [vmem:[%s5763_s11 + $0x38] sm:$0xff]   ;;  %v4549_v38 = vld [vmem:[%s5763_s11] sm:$0xff]  }
 0x686   :  { %4586 = vpow2.f32 %v3778_v61  ;;  %v4546_v7 = vld [vmem:[%s5763_s11 + $0x18] sm:$0xff]  }
 0x691   :  { %v4585_v20 = vpop.eup %4584 }
 0x692   :  { %v2737_v26 = vadd.f32 1.0, %v4585_v20 }
 0x693   :  { %v4587_v33 = vpop.eup %4586 }
 0x694   :  { %4588 = vrcp.f32 %v2737_v26  ;;  %v2744_v21 = vadd.f32 1.0, %v4587_v33 }
 0x696   :  { %4590 = vrcp.f32 %v2744_v21  ;;  %v325_v21 = vpop.permute.xlu1 %324 }
 0x69d   :  { %v2486_v10 = vpop.f32.mrf.mxu1 }
 0x69e   :  { %v2487_v56 = vadd.f32 %v2486_v10, %v5235_v31  ;;  %v4547_v10 = vld [vmem:[%s5763_s11 + $0x10] sm:$0xff]  }
 0x69f   :  { %v4203_v25 = vpop.f32.mrf.mxu1 }
 0x6a0   :  { %v4548_v25 = vld [vmem:[%s5763_s11 + $0x8] sm:$0xff]  }
 0x6a1   :  { %v2489_v43 = vpop.f32.mrf.mxu1  ;;  %v4589_v58 = vpop.eup %4588 }
 0x6a2   :  { %v5710_v43 = vpop.xlane.xlu0 %1613 }
 0x6a3   :  { %v4204_v48 = vpop.f32.mrf.mxu1  ;;  %v4591_v39 = vpop.eup %4590  ;;  %v1615_v35 = vsub.f32 %v5524_v44, %v5710_v43 }
 0x6a4   :  { %v2750_v22 = vsub.f32 1.0, %v4591_v39  ;;  %v2752_v28 = vmul.f32 %v4591_v39, %v5536_v53  ;;  %v4528_v53 = vld [vmem:[#allocation12 + $0x80] ss:$12 sps:$4 sm:$0xff]  }
 0x6a5   :  { %v1616_v48 = vmul.f32 1.442695, %v1615_v35 }
 0x6bd   :  { %v2727_v23 = vpop.f32.mrf.mxu1 }
 0x6be   :  { %v2728_v45 = vadd.f32 %v2727_v23, %v5233_v30 }
 0x6bf   :  { %v4223_v55 = vpop.f32.mrf.mxu1 }
 0x6c0   :  { %v2747_v12 = vmul.f32 %v4589_v58, %v2728_v45  ;;  %v327_v55 = vsel %vm263_vm3, %v325_v21, 0.0 }
 0x6c1   :  { %v2730_v14 = vpop.f32.mrf.mxu1 }
 0x6c2   :  { %v2748_v49 = vadd.f32 %v2747_v12, %v2487_v56 }
 0x6c3   :  { %v4224_v4 = vpop.f32.mrf.mxu1 }
 0x6c4   :  { %4592 = vtanh.f32 %v2748_v49 }
 0x6c5   :  { %4594 = vpow2.f32 %v1616_v48 }
 0x6d1   :  { %v4593_v57 = vpop.eup %4592 }
 0x6d2   :  { %v2751_v51 = vmul.f32 %v4593_v57, %v2750_v22  ;;  %v4595_v56 = vpop.eup %4594 }
 0x6d4   :  { %v5649_v36 = vadd.f32 %v2752_v28, %v2751_v51 }
 0x6d6   :  { %v2754_v47 = vpack.c.bf16 %v5649_v36, %v5649_v36 }
 0x6d8   :  { %4242 = vmatmul.mubr.bf16.vlgmr.msra.gmra.mxu0 %v2754_v47  ;;  %3308 = vmatmul.mubr.bf16.vlgmr.msra.gmra.mxu1 %v2754_v47 }
 0x6d9   :  { %4246 = vmatpush3.bf16.msra.mxu0 %v4526_v27  ;;  %4261 = vmatprep.mubr.msk.bf16.mxu0 %vm4862_vm0, %v4861_v0 }
 0x6da   :  { %4247 = vmatprep.subr.bf16.mxu0 %v4861_v0  ;;  %4301 = vmatprep.mubr.msk.bf16.mxu1 %vm4862_vm0, %v4861_v0 }
 0x6db   :  { %4286 = vmatpush3.bf16.msra.mxu1 %v4542_v29 }
 0x6dc   :  { %4287 = vmatprep.subr.bf16.mxu1 %v4861_v0 }
 0x6dd   :  { %4248 = vmatpush3.bf16.msra.mxu0 %v4527_v52  ;;  %v5660_v59 = vpop.f32.mrf.mxu1 }
 0x6de   :  { %4249 = vmatprep.subr.bf16.mxu0 %v4861_v0 }
 0x6df   :  { %v5663_v37 = vpop.f32.mrf.mxu1  ;;  %4288 = vmatpush3.bf16.msra.mxu1 %v4543_v40 }
 0x6e0   :  { %4289 = vmatprep.subr.bf16.mxu1 %v4861_v0  ;;  %v3071_v51 = vadd.f32 %v5663_v37, %v5227_v41 }
 0x6e1   :  { %4250 = vmatpush3.bf16.msra.mxu0 %v4528_v53  ;;  %v3072_v63 = vpop.f32.mrf.mxu1 }
 0x6e2   :  { %4251 = vmatprep.subr.bf16.mxu0 %v4861_v0 }
 0x6e3   :  { %v3073_v3 = vpop.f32.mrf.mxu1  ;;  %4290 = vmatpush3.bf16.msra.mxu1 %v4544_v1 }
 0x6e4   :  { %4291 = vmatprep.subr.bf16.mxu1 %v4861_v0 }
 0x6e5   :  { %4252 = vmatpush3.bf16.msra.mxu0 %v4529_v42 }
 0x6e6   :  { %4253 = vmatprep.subr.bf16.mxu0 %v4861_v0 }
 0x6e7   :  { %4292 = vmatpush3.bf16.msra.mxu1 %v4545_v34 }
 0x6e8   :  { %4293 = vmatprep.subr.bf16.mxu1 %v4861_v0 }
 0x6e9   :  { %4254 = vmatpush3.bf16.msra.mxu0 %v4530_v62 }
 0x6ea   :  { %4255 = vmatprep.subr.bf16.mxu0 %v4861_v0 }
 0x6eb   :  { %4294 = vmatpush3.bf16.msra.mxu1 %v4546_v7 }
 0x6ec   :  { %4295 = vmatprep.subr.bf16.mxu1 %v4861_v0 }
 0x6ed   :  { %4256 = vmatpush3.bf16.msra.mxu0 %v4531_v2 }
 0x6ee   :  { %4257 = vmatprep.subr.bf16.mxu0 %v4861_v0 }
 0x6ef   :  { %4296 = vmatpush3.bf16.msra.mxu1 %v4547_v10 }
 0x6f0   :  { %4297 = vmatprep.subr.bf16.mxu1 %v4861_v0 }
 0x6f1   :  { %4258 = vmatpush3.bf16.msra.mxu0 %v4532_v5 }
 0x6f2   :  { %4259 = vmatprep.subr.bf16.mxu0 %v4861_v0 }
 0x6f3   :  { %4298 = vmatpush3.bf16.msra.mxu1 %v4548_v25 }
 0x6f4   :  { %4299 = vmatprep.subr.bf16.mxu1 %v4861_v0 }
 0x6f5   :  { %4260 = vmatpush3.bf16.msra.mxu0 %v4533_v6 }
 0x6f6   :  { %4265 = vmatprep.subr.bf16.mxu0 %v4861_v0 }
 0x6f7   :  { %4300 = vmatpush3.bf16.msra.mxu1 %v4549_v38 }
 0x6f8   :  { %4262 = vmatmul.mubr.bf16.vlgmr.msra.gmra.mxu0 %v5587_v60  ;;  %v4539_v60 = vld [vmem:[#allocation14 + $0x38] ss:$12 sps:$4 sm:$0xff]  }
 0x6f9   :  { %4266 = vmatpush3.bf16.msra.mxu0 %v4534_v8  ;;  %4281 = vmatprep.mubr.msk.bf16.mxu0 %vm4862_vm0, %v4861_v0 }
 0x6fa   :  { %4267 = vmatprep.subr.bf16.mxu0 %v4861_v0 }
 0x6fd   :  { %4268 = vmatpush3.bf16.msra.mxu0 %v4535_v9 }
 0x6fe   :  { %4269 = vmatprep.subr.bf16.mxu0 %v4861_v0 }
 0x701   :  { %4270 = vmatpush3.bf16.msra.mxu0 %v4536_v17 }
 0x702   :  { %4271 = vmatprep.subr.bf16.mxu0 %v4861_v0 }
 0x705   :  { %4272 = vmatpush3.bf16.msra.mxu0 %v4537_v18 }
 0x706   :  { %4273 = vmatprep.subr.bf16.mxu0 %v4861_v0 }
 0x709   :  { %4274 = vmatpush3.bf16.msra.mxu0 %v4538_v24 }
 0x70a   :  { %4275 = vmatprep.subr.bf16.mxu0 %v4861_v0 }
 0x70d   :  { %4276 = vmatpush3.bf16.msra.mxu0 %v4539_v60 }
 0x70e   :  { %4277 = vmatprep.subr.bf16.mxu0 %v4861_v0 }
 0x711   :  { %4278 = vmatpush3.bf16.msra.mxu0 %v4540_v15 }
 0x712   :  { %4279 = vmatprep.subr.bf16.mxu0 %v4861_v0 }
 0x715   :  { %4280 = vmatpush3.bf16.msra.mxu0 %v4541_v13 }
 0x718   :  { %4282 = vmatmul.mubr.bf16.vlgmr.msra.gmra.mxu0 %v2754_v47 }
 0x798   :  { %v2853_v54 = vpop.f32.mrf.mxu0  ;;  %v3309_v61 = vpop.f32.mrf.mxu1 }
 0x799   :  { %v5715_v20 = vadd.f32 %v5344_v46, %v2853_v54  ;;  %v3310_v12 = vadd.f32 %v3309_v61, %v5219_v19  ;;  %v3069_v46 = vadd.f32 %v5660_v59, %v5217_v16 }
 0x79a   :  { %v4243_v26 = vpop.f32.mrf.mxu0  ;;  %v3311_v33 = vpop.f32.mrf.mxu1 }
 0x79b   :  { %2859 = vmax.xlane.f32.xlu1 %v5715_v20  ;;  %v3356_v14 = vadd.f32 %v3310_v12, %v3069_v46  ;;  %v3312_v22 = vadd.f32 %v3311_v33, %v5225_v32  ;;  %v2237_v26 = vpop.xlane.xlu0 %2236 }
 0x79c   :  { %v2856_v23 = vpop.f32.mrf.mxu0  ;;  %v3313_v0 = vpop.f32.mrf.mxu1  ;;  %v2238_v21 = vsub.f32 %v5637_v11, %v2237_v26 }
 0x79d   :  { %v3835_v49 = vmul.f32 -1.442695, %v3356_v14  ;;  %v3363_v27 = vadd.f32 %v3312_v22, %v3071_v51 }
 0x79e   :  { %v4244_v45 = vpop.f32.mrf.mxu0  ;;  %v3314_v58 = vpop.f32.mrf.mxu1  ;;  %v2239_v23 = vmul.f32 1.442695, %v2238_v21 }
 0x79f   :  { %328 = vadd.xlane.f32.xlu1 %v327_v55  ;;  %4596 = vpow2.f32 %v3835_v49  ;;  %v3836_v47 = vmul.f32 -1.442695, %v3363_v27 }
 0x7a1   :  { %4598 = vpow2.f32 %v3836_v47 }
 0x7a3   :  { %1618 = vadd.xlane.f32.xlu1 %v4595_v56 }
 0x7ac   :  { %v4597_v52 = vpop.eup %4596 }
 0x7ad   :  { %v3360_v19 = vadd.f32 1.0, %v4597_v52 }
 0x7ae   :  { %v4599_v53 = vpop.eup %4598 }
 0x7af   :  { %4600 = vrcp.f32 %v3360_v19  ;;  %v3367_v16 = vadd.f32 1.0, %v4599_v53 }
 0x7b1   :  { %4602 = vrcp.f32 %v3367_v16 }
 0x7b8   :  { %v3109_v4 = vpop.f32.mrf.mxu0 }
 0x7b9   :  { %v3110_v32 = vadd.f32 %v3109_v4, %v5235_v31 }
 0x7ba   :  { %v4263_v39 = vpop.f32.mrf.mxu0 }
 0x7bc   :  { %v3112_v57 = vpop.f32.mrf.mxu0  ;;  %v4601_v62 = vpop.eup %4600 }
 0x7be   :  { %v4264_v28 = vpop.f32.mrf.mxu0  ;;  %v4603_v5 = vpop.eup %4602 }
 0x7bf   :  { %v3373_v6 = vsub.f32 1.0, %v4603_v5  ;;  %v3375_v17 = vmul.f32 %v4603_v5, %v5649_v36 }
 0x7d8   :  { %v3350_v42 = vpop.f32.mrf.mxu0 }
 0x7d9   :  { %v3351_v59 = vadd.f32 %v3350_v42, %v5233_v30  ;;  %v5728_v30 = vpop.xlane.xlu1 %991 }
 0x7da   :  { %v4283_v63 = vpop.f32.mrf.mxu0  ;;  %v993_v61 = vsub.f32 %v5347_v50, %v5728_v30 }
 0x7db   :  { %v3370_v2 = vmul.f32 %v4601_v62, %v3351_v59 }
 0x7dc   :  { %v3353_v3 = vpop.f32.mrf.mxu0  ;;  %v994_v33 = vmul.f32 1.442695, %v993_v61 }
 0x7dd   :  { %v3371_v41 = vadd.f32 %v3370_v2, %v3110_v32 }
 0x7de   :  { %v4284_v37 = vpop.f32.mrf.mxu0 }
 0x7df   :  { %4604 = vtanh.f32 %v3371_v41 }
 0x7ec   :  { %v4605_v8 = vpop.eup %4604 }
 0x7ed   :  { %v3374_v9 = vmul.f32 %v4605_v8, %v3373_v6 }
 0x7ef   :  { %v3376_v18 = vadd.f32 %v3375_v17, %v3374_v9 }
 0x7f1   :  { %v3377_v24 = vpack.c.bf16 %v3376_v18, %v3376_v18  ;;  %3495 = vst [vmem:[#allocation18] sm:$0xff] %v3376_v18 }
 0x7f3   :  { %4302 = vmatmul.mubr.bf16.vlgmr.msra.gmra.mxu1 %v3377_v24 }
 0x824   :  { %v2860_v60 = vpop.xlane.xlu1 %2859 }
 0x825   :  { %v2861_v31 = vsub.f32 %v5715_v20, %v2860_v60 }
 0x827   :  { %v2862_v15 = vmul.f32 1.442695, %v2861_v31 }
 0x828   :  { %v329_v13 = vpop.xlane.xlu1 %328 }
 0x829   :  { %4606 = vpow2.f32 %v2862_v15  ;;  %v330_v29 = vrot.slane %v329_v13, 4 }
 0x82b   :  { %v331_v40 = vadd.f32 %v330_v29, %v329_v13 }
 0x82c   :  { %v1619_v1 = vpop.xlane.xlu1 %1618 }
 0x82d   :  { %v332_v34 = vrot.slane %v331_v40, 2  ;;  %4608 = vlog2.f32 %v1619_v1 }
 0x82e   :  { %4610 = vpow2.f32 %v994_v33 }
 0x82f   :  { %v333_v7 = vadd.f32 %v332_v34, %v331_v40  ;;  %4612 = vpow2.f32 %v2239_v23 }
 0x831   :  { %v334_v10 = vrot.slane %v333_v7, 1 }
 0x833   :  { %v335_v36 = vadd.f32 %v334_v10, %v333_v7 }
 0x835   :  { %4305 = vpush %v335_v36 }
 0x836   :  { %v4607_v25 = vpop.eup %4606 }
 0x837   :  { %2864 = vadd.xlane.f32.xlu1 %v4607_v25 }
 0x83a   :  { %v4609_v38 = vpop.eup %4608 }
 0x83b   :  { %v1621_v35 = vmul.f32 0.6931472, %v4609_v38  ;;  %v4611_v55 = vpop.eup %4610 }
 0x83c   :  { %v4613_v12 = vpop.eup %4612 }
 0x83d   :  { %v1622_v48 = vadd.f32 %v1621_v35, %v5710_v43  ;;  %v4624_v43 = vld [vmem:[%s5764_s12] ss:$0 sm:$0xff]  ;;  %s4866_s12 = smov [#allocation18]  }
 0x83e   :  { %s3514_s25 = sshll.u32 %s4866_s12, 4  ;;  %s3515_s25 = int_to_ptr.vmem [resolvable:$true] %s3514_s25 }
 0x83f   :  { %v1623_v54 = vsub.f32 %v5524_v44, %v1622_v48  ;;  %s4785_s6 = scalar_lea.vmem %s3515_s25, 128  ;;  %p4790_p13 = scmp.lt.s32.totalorder %s3515_s25, %s3515_s25 }
 0x840   :  { %p4786_p12 = scmp.ne.s32.totalorder %s3515_s25, %s4785_s6  ;;  %p4791_p0 = scmp.lt.s32.totalorder %s4785_s6, %s4785_s6 }
 0x841   :  { %1625 = vst [vmem:[#allocation17 + $0x8] sm:$0xff] %v1623_v54 }
 0x842   :  { %p4792_p1 = por %p4791_p0, %p4790_p13 }
 0x844   :  { %p4793_p2 = pnand %p4792_p1, %p4786_p12 }
 0x866   :  { %s4306_s11 = spop %4305 }
 0x867   :  { %s337_s5 = smul.f32 -0.5, %s4306_s11 }
 0x869   :  { %339 = sst [smem:[#allocation20]] %s337_s5 }
 0x8b3   :  { %v3476_v0 = vpop.f32.mrf.mxu1 }
 0x8b4   :  { %v3477_v44 = vadd.f32 %v4624_v43, %v3476_v0 }
 0x8b5   :  { %v4303_v45 = vpop.f32.mrf.mxu1 }
 0x8b6   :  { %3482 = vmax.xlane.f32.xlu0 %v3477_v44 }
 0x8b7   :  { %v3479_v58 = vpop.f32.mrf.mxu1 }
 0x8b9   :  { %v4304_v56 = vpop.f32.mrf.mxu1 }
 0x8ba   :  { %996 = vadd.xlane.f32.xlu0 %v4611_v55 }
 0x8be   :  { %2241 = vadd.xlane.f32.xlu0 %v4613_v12 }
 0x8c0   :  { %v2865_v46 = vpop.xlane.xlu1 %2864 }
 0x8c1   :  { %4614 = vlog2.f32 %v2865_v46 }
 0x8ce   :  { %v4615_v14 = vpop.eup %4614 }
 0x8cf   :  { %v2867_v49 = vmul.f32 0.6931472, %v4615_v14 }
 0x8d1   :  { %v2868_v4 = vadd.f32 %v2867_v49, %v2860_v60 }
 0x8d3   :  { %v2869_v39 = vsub.f32 %v5715_v20, %v2868_v4 }
 0x8d5   :  { %2871 = vst [vmem:[#allocation17 + $0x18] sm:$0xff] %v2869_v39 }
 0x93f   :  { %v3483_v22 = vpop.xlane.xlu0 %3482 }
 0x940   :  { %v3484_v57 = vsub.f32 %v3477_v44, %v3483_v22 }
 0x942   :  { %v3485_v51 = vmul.f32 1.442695, %v3484_v57 }
 0x943   :  { %v997_v28 = vpop.xlane.xlu0 %996 }
 0x944   :  { %4616 = vpow2.f32 %v3485_v51 }
 0x945   :  { %4618 = vlog2.f32 %v997_v28 }
 0x947   :  { %v2242_v27 = vpop.xlane.xlu0 %2241 }
 0x948   :  { %4620 = vlog2.f32 %v2242_v27 }
 0x951   :  { %v4617_v47 = vpop.eup %4616 }
 0x952   :  { %v4619_v52 = vpop.eup %4618  ;;  %3487 = vadd.xlane.f32.xlu0 %v4617_v47 }
 0x953   :  { %v999_v19 = vmul.f32 0.6931472, %v4619_v52 }
 0x955   :  { %v4621_v53 = vpop.eup %4620  ;;  %v1000_v16 = vadd.f32 %v999_v19, %v5728_v30 }
 0x956   :  { %v2244_v42 = vmul.f32 0.6931472, %v4621_v53 }
 0x957   :  { %v1001_v59 = vsub.f32 %v5347_v50, %v1000_v16 }
 0x958   :  { %v2245_v20 = vadd.f32 %v2244_v42, %v2237_v26 }
 0x959   :  { %1002 = vst [vmem:[#allocation17] sm:$0xff] %v1001_v59 }
 0x95a   :  { %v2246_v62 = vsub.f32 %v5637_v11, %v2245_v20 }
 0x95c   :  { %2248 = vst [vmem:[#allocation17 + $0x10] sm:$0xff] %v2246_v62 }
 0x95d   :  { %4796 = shalt.err (!%p4793_p2)
}
 0x95e   :  { %3517 = dma.vmem_to_hbm [thread:$0]  %s3515_s25, 128, %s5766_s14, [#allocation19]  }
 0x95f   :  { %s4867_s8 = smov [#allocation20]   ;;  %s4868_s18 = smov [#allocation17]  }
 0x960   :  { %3525 = dma.smem_to_hbm %s4867_s8, 16, %s5767_s15, [#allocation5]  }
 0x961   :  { %s3501_s7 = sshll.u32 %s4868_s18, 4  ;;  %s3502_s7 = int_to_ptr.vmem [resolvable:$true] %s3501_s7 }
 0x962   :  { %s4813_s9 = scalar_lea.vmem %s3502_s7, 640  ;;  %p4818_p4 = scmp.lt.s32.totalorder %s3502_s7, %s3502_s7 }
 0x963   :  { %p4814_p3 = scmp.ne.s32.totalorder %s3502_s7, %s4813_s9  ;;  %p4819_p5 = scmp.lt.s32.totalorder %s4813_s9, %s4813_s9 }
 0x965   :  { %p4820_p6 = por %p4819_p5, %p4818_p4 }
 0x967   :  { %p4821_p7 = pnand %p4820_p6, %p4814_p3 }
 0x9db   :  { %v3488_v50 = vpop.xlane.xlu0 %3487 }
 0x9dc   :  { %4622 = vlog2.f32 %v3488_v50 }
 0x9e9   :  { %v4623_v11 = vpop.eup %4622 }
 0x9ea   :  { %v3490_v63 = vmul.f32 0.6931472, %v4623_v11 }
 0x9ec   :  { %v3491_v32 = vadd.f32 %v3490_v63, %v3483_v22 }
 0x9ee   :  { %v3492_v2 = vsub.f32 %v3477_v44, %v3491_v32 }
 0x9f0   :  { %3494 = vst [vmem:[#allocation17 + $0x20] sm:$0xff] %v3492_v2 }
 0x9f1   :  { %4824 = shalt.err (!%p4821_p7)
}
 0x9f2   :  { %s4869_s14 = smov 128   ;;  %s4870_s26 = smov 8  }
 0x9f3   :  { %3507 = dma.vmem_to_hbm [thread:$0]  %s3502_s7, 640, %s5765_s13, [#allocation4], %s4869_s14, %s4869_s14, %s4870_s26  }
 0x9f4   :  { %4843 = dma.done.wait [#allocation4], 640  }
 0x9f5   :  { %4844 = vsyncadd [#allocation4], 4294966656 }
 0x9f6   :  { %4845 = dma.done.wait [#allocation19], 128  }
 0x9f7   :  { %4846 = vsyncadd [#allocation19], 4294967168 }
 0x9f8   :  { %4847 = dma.done.wait [#allocation5], 16  }
 0x9f9   :  { %4848 = vsyncadd [#allocation5], 4294967280 }
 0x9fa   :  { %3535 = sfence }
 0x9fb   :  { %3536 = vsyncpa [#allocation3], 1 }
 0x9fc   :  { %3537 = vsyncpa [#allocation7], 1 }
 0x9fd   :  { %3538 = vsyncpa [#allocation10], 1 }
 0x9fe   :  { %3539 = vsyncpa [#allocation13], 1 }
 0x9ff   :  { %3540 = vsyncpa [#allocation16], 1 }
 0xa00   :  { %3541 = vsyncpa [#allocation4], 1 }
 0xa01   :  { %3542 = vsyncpa [#allocation19], 1 }
 0xa02   :  { %3543 = vsyncpa [#allocation5], 1 }

</bundles_post_ra>
